<compile_context>
chip_gen: v7x
topology: tpu7x:2x2x1
jax: 0.10.0
libtpu: 0.0.40
codegen_flags: <defaults>
</compile_context>

<pallas_src>
import functools

import jax
import jax.numpy as jnp
from jax.experimental import pallas as pl
from jax.experimental.pallas import tpu as pltpu


# ----------------------------------------------------------------------------
# Fused kernel: GRU + attention + concat (phase 0, tile 0), vocab projection
# with online softmax stats (phase 0, every tile), normalize+write (phase 1).
# ----------------------------------------------------------------------------
def fused_decoder_kernel(x_ref, h_ref, enc_ref,
                         wi_ref, wh_ref, bi_ref, bh_ref,
                         wc_ref, bc_ref, wo_ref, bo_ref,
                         hnew_ref, probs_ref,
                         cat_scr, logits_scr, m_scr, l_scr,
                         *, seq_len):
    phase = pl.program_id(0)
    j = pl.program_id(1)
    Hp = hnew_ref.shape[1]

    # ---------------- phase 0, tile 0: GRU + dot attention + concat ----------
    @pl.when((phase == 0) & (j == 0))
    def _():
        x = x_ref[...]                                   # (Bp, Hp) bf16
        h = h_ref[...]                                   # (Bp, Hp) f32

        # GRU cell: two wide MXU matmuls (columns are [r | z | n]).
        gi = jnp.dot(x, wi_ref[...], preferred_element_type=jnp.float32) + bi_ref[...]
        gh = jnp.dot(h.astype(jnp.bfloat16), wh_ref[...],
                     preferred_element_type=jnp.float32) + bh_ref[...]
        r = jax.nn.sigmoid(gi[:, 0:Hp] + gh[:, 0:Hp])
        z = jax.nn.sigmoid(gi[:, Hp:2 * Hp] + gh[:, Hp:2 * Hp])
        n = jnp.tanh(gi[:, 2 * Hp:3 * Hp] + r * gh[:, 2 * Hp:3 * Hp])
        h_new = (1.0 - z) * n + z * h                    # (Bp, Hp) f32
        hnew_ref[...] = h_new

        # Dot attention; enc stays bf16, products promote to f32.
        enc = enc_ref[...]                               # (Bp, Sp, Hp) bf16
        scores = jnp.sum(enc * h_new[:, None, :], axis=2)          # (Bp, Sp) f32
        s_idx = jax.lax.broadcasted_iota(jnp.int32, scores.shape, 1)
        scores = jnp.where(s_idx < seq_len, scores, -1e30)         # mask seq pad
        scores = scores - jnp.max(scores, axis=1, keepdims=True)
        p_att = jnp.exp(scores)
        inv = pl.reciprocal(jnp.sum(p_att, axis=1, keepdims=True), approx=True)
        attn = p_att * inv                                          # (Bp, Sp)
        context = jnp.sum(attn[:, :, None] * enc, axis=1)           # (Bp, Hp) f32

        # concat(h_new, context) -> Linear -> tanh : one fused matmul.
        cat_in = jnp.concatenate([h_new.astype(jnp.bfloat16),
                                  context.astype(jnp.bfloat16)], axis=1)
        cat = jnp.tanh(jnp.dot(cat_in, wc_ref[...],
                               preferred_element_type=jnp.float32) + bc_ref[...])
        cat_scr[...] = cat.astype(jnp.bfloat16)

        # init online-softmax stats
        m_scr[...] = jnp.full(m_scr.shape, -jnp.inf, dtype=jnp.float32)
        l_scr[...] = jnp.zeros(l_scr.shape, dtype=jnp.float32)

    # ---------------- phase 0: vocab projection tile + running max/sum -------
    @pl.when(phase == 0)
    def _():
        logits = (jnp.dot(cat_scr[...], wo_ref[...],
                          preferred_element_type=jnp.float32) + bo_ref[...])
        logits_scr[j] = logits                            # stays in VMEM
        t_max = jnp.max(logits, axis=1, keepdims=True)
        m_new = jnp.maximum(m_scr[...], t_max)
        l_scr[...] = (l_scr[...] * jnp.exp(m_scr[...] - m_new)
                      + jnp.sum(jnp.exp(logits - m_new), axis=1, keepdims=True))
        m_scr[...] = m_new

    # ---------------- phase 1: normalize and write probability tiles ---------
    @pl.when((phase == 1) & (j == 0))
    def _():
        # exact reciprocal (one divide per row) for the final vocab softmax
        l_scr[...] = 1.0 / l_scr[...]

    @pl.when(phase == 1)
    def _():
        probs_ref[...] = jnp.exp(logits_scr[j] - m_scr[...]) * l_scr[...]


# ----------------------------------------------------------------------------
# Parameters
# ----------------------------------------------------------------------------
def init_params(key, vocab_size, hidden_size, output_size):
    H, V = hidden_size, output_size
    ks = jax.random.split(key, 9)
    s = 0.1
    return {
        'embedding': jax.random.normal(ks[0], (vocab_size, H), jnp.float32) * s,
        'w_i': jax.random.normal(ks[1], (H, 3 * H), jnp.float32) * s,
        'w_h': jax.random.normal(ks[2], (H, 3 * H), jnp.float32) * s,
        'b_i': jax.random.normal(ks[3], (1, 3 * H), jnp.float32) * s,
        'b_h': jax.random.normal(ks[4], (1, 3 * H), jnp.float32) * s,
        'concat_w': jax.random.normal(ks[5], (2 * H, H), jnp.float32) * s,
        'concat_b': jax.random.normal(ks[6], (1, H), jnp.float32) * s,
        'out_w': jax.random.normal(ks[7], (H, V), jnp.float32) * s,
        'out_b': jax.random.normal(ks[8], (1, V), jnp.float32) * s,
    }


def _round_up(n, m):
    return ((n + m - 1) // m) * m


def pack_params(params, tile_v=512):
    """Pad to TPU-friendly tiles, cast MXU operands to bf16 (one-time)."""
    H = params['concat_b'].shape[1]
    V = params['out_w'].shape[1]
    Hp = _round_up(H, 128)
    TV = min(_round_up(tile_v, 128), _round_up(V, 128))   # 512 for real vocab
    Vp = _round_up(V, TV)

    def pad2(a, rows, cols, value=0.0):
        return jnp.pad(a, ((0, rows - a.shape[0]), (0, cols - a.shape[1])),
                       constant_values=value)

    def pad_gates(w, rows):
        blocks = jnp.split(w, 3, axis=1)
        return jnp.concatenate([pad2(b, rows, Hp) for b in blocks], axis=1)

    emb = params['embedding']
    return {
        'H': H, 'V': V, 'Hp': Hp, 'Vp': Vp, 'TV': TV,
        'embedding': pad2(emb, emb.shape[0], Hp).astype(jnp.bfloat16),
        'w_i': pad_gates(params['w_i'], Hp).astype(jnp.bfloat16),
        'w_h': pad_gates(params['w_h'], Hp).astype(jnp.bfloat16),
        'b_i': pad_gates(params['b_i'], 1),
        'b_h': pad_gates(params['b_h'], 1),
        'concat_w': jnp.concatenate(
            [pad2(params['concat_w'][:H], Hp, Hp),
             pad2(params['concat_w'][H:], Hp, Hp)], axis=0).astype(jnp.bfloat16),
        'concat_b': pad2(params['concat_b'], 1, Hp),
        'out_w': pad2(params['out_w'], Hp, Vp).astype(jnp.bfloat16),
        # -1e30 bias in padded vocab columns -> softmax prob ~ 0 there
        'out_b': pad2(params['out_b'], 1, Vp, value=-1e30),
    }


def prepare_encoder_outputs(encoder_outputs, Hp):
    """One-time (per source sentence) prep: (S,B,H) -> padded (Bp,Sp,Hp) bf16."""
    S, B, H = encoder_outputs.shape
    Sp = _round_up(S, 16)
    Bp = _round_up(B, 16)
    enc = jnp.transpose(encoder_outputs, (1, 0, 2))          # (B, S, H)
    enc = jnp.pad(enc, ((0, Bp - B), (0, Sp - S), (0, Hp - H)))
    return enc.astype(jnp.bfloat16)


# ----------------------------------------------------------------------------
# Forward (single decode step)
# ----------------------------------------------------------------------------
def luong_attn_decoder_step(packed, input_step, last_hidden, enc_prepped, seq_len):
    """input_step: (1,B) int32, last_hidden: (1,B,H), enc_prepped: (Bp,Sp,Hp) bf16."""
    H, V = packed['H'], packed['V']
    Hp, Vp, TV = packed['Hp'], packed['Vp'], packed['TV']
    B = input_step.shape[1]
    Bp, Sp = enc_prepped.shape[0], enc_prepped.shape[1]
    num_tiles = Vp // TV

    # Embedding lookup (XLA gather glue); embedding_dropout is identity at inference.
    # TODO(synk): training-mode embedding dropout is not emulated.
    x = packed['embedding'][input_step[0]]                    # (B, Hp) bf16
    x = jnp.pad(x, ((0, Bp - B), (0, 0)))
    h0 = jnp.pad(last_hidden[0], ((0, Bp - B), (0, Hp - H)))  # (Bp, Hp) f32

    def _resident(shape):
        zeros = (0,) * len(shape)
        return pl.BlockSpec(shape, lambda p, j: zeros)

    h_new, probs = pl.pallas_call(
        functools.partial(fused_decoder_kernel, seq_len=seq_len),
        out_shape=(jax.ShapeDtypeStruct((Bp, Hp), jnp.float32),
                   jax.ShapeDtypeStruct((Bp, Vp), jnp.float32)),
        grid=(2, num_tiles),                                  # (phase, vocab tile)
        in_specs=[
            _resident((Bp, Hp)),                              # x
            _resident((Bp, Hp)),                              # h0
            _resident((Bp, Sp, Hp)),                          # encoder outputs
            _resident((Hp, 3 * Hp)),                          # w_i
            _resident((Hp, 3 * Hp)),                          # w_h
            _resident((1, 3 * Hp)),                           # b_i
            _resident((1, 3 * Hp)),                           # b_h
            _resident((2 * Hp, Hp)),                          # concat_w
            _resident((1, Hp)),                               # concat_b
            # out_w / out_b stream tile-by-tile during phase 0, pinned in phase 1
            pl.BlockSpec((Hp, TV), lambda p, j: (0, j * (1 - p))),
            pl.BlockSpec((1, TV), lambda p, j: (0, j * (1 - p))),
        ],
        out_specs=(
            pl.BlockSpec((Bp, Hp), lambda p, j: (0, 0)),      # h_new (resident)
            pl.BlockSpec((Bp, TV), lambda p, j: (0, j * p)),  # probs (phase 1 writes)
        ),
        scratch_shapes=[
            pltpu.VMEM((Bp, Hp), jnp.bfloat16),               # concat output (cat)
            pltpu.VMEM((num_tiles, Bp, TV), jnp.float32),     # logits kept on-chip
            pltpu.VMEM((Bp, 1), jnp.float32),                 # running max
            pltpu.VMEM((Bp, 1), jnp.float32),                 # running sum-exp
        ],
        compiler_params=pltpu.CompilerParams(
            dimension_semantics=("arbitrary", "arbitrary"),
            vmem_limit_bytes=48 * 1024 * 1024),
    )(x, h0, enc_prepped,
      packed['w_i'], packed['w_h'], packed['b_i'], packed['b_h'],
      packed['concat_w'], packed['concat_b'],
      packed['out_w'], packed['out_b'])

    out = probs[:B, :V]                        # (B, V)
    hidden = h_new[:B, :H][None]               # (1, B, H)
    return out, hidden


# ----------------------------------------------------------------------------
# Plain-JAX f32 reference (mirrors the PyTorch forward, dot attention)
# ----------------------------------------------------------------------------
def reference_forward(params, input_step, last_hidden, encoder_outputs):
    x = params['embedding'][input_step[0]]
    h = last_hidden[0]
    H = h.shape[1]
    gi = x @ params['w_i'] + params['b_i']
    gh = h @ params['w_h'] + params['b_h']
    r = jax.nn.sigmoid(gi[:, :H] + gh[:, :H])
    z = jax.nn.sigmoid(gi[:, H:2 * H] + gh[:, H:2 * H])
    n = jnp.tanh(gi[:, 2 * H:] + r * gh[:, 2 * H:])
    h_new = (1.0 - z) * n + z * h
    enc = jnp.transpose(encoder_outputs, (1, 0, 2))            # (B, S, H)
    scores = jnp.einsum('bh,bsh->bs', h_new, enc)
    attn = jax.nn.softmax(scores, axis=1)
    context = jnp.einsum('bs,bsh->bh', attn, enc)
    cat_in = jnp.concatenate([h_new, context], axis=1)
    concat_out = jnp.tanh(cat_in @ params['concat_w'] + params['concat_b'])
    out = jax.nn.softmax(concat_out @ params['out_w'] + params['out_b'], axis=1)
    return out, h_new[None]


if __name__ == "__main__":
    B, H, S, V = 2, 32, 8, 64       # batch, hidden_size, max_len, output/vocab size

    key = jax.random.PRNGKey(0)
    kp, k1, k2, k3 = jax.random.split(key, 4)
    params = init_params(kp, vocab_size=V, hidden_size=H, output_size=V)
    packed = pack_params(params)    # one-time weight padding / bf16 cast

    input_step = jax.random.randint(k1, (1, B), 0, V, dtype=jnp.int32)      # (1, B)
    last_hidden = jax.random.normal(k2, (1, B, H), jnp.float32)             # (1, B, H)
    encoder_outputs = jax.random.normal(k3, (S, B, H), jnp.float32)         # (S, B, H)

    # Loop-invariant encoder prep hoisted out of the per-step path.
    enc_prepped = prepare_encoder_outputs(encoder_outputs, packed['Hp'])

    out, hidden = jax.block_until_ready(
        luong_attn_decoder_step(packed, input_step, last_hidden, enc_prepped,
                                seq_len=S))

    ref_out, ref_hidden = reference_forward(params, input_step, last_hidden,
                                            encoder_outputs)
    assert out.shape == (B, V) and hidden.shape == (1, B, H)
    # bf16 matmul operands + approx reciprocal (attention) -> relaxed tolerances
    assert jnp.allclose(out, ref_out, atol=2e-2, rtol=2e-2), \
        float(jnp.max(jnp.abs(out - ref_out)))
    assert jnp.allclose(hidden, ref_hidden, atol=2e-2, rtol=2e-2), \
        float(jnp.max(jnp.abs(hidden - ref_hidden)))
    print("KERNEL_OK")
</pallas_src>

<mosaic_0001>
module attributes {stable_mosaic.version = 11 : i64} {
  func.func @fused_decoder_kernel(%arg0: i32, %arg1: i32, %arg2: memref<16x128xbf16, #tpu.memory_space<vmem>>, %arg3: memref<16x128xf32, #tpu.memory_space<vmem>>, %arg4: memref<16x16x128xbf16, #tpu.memory_space<vmem>>, %arg5: memref<128x384xbf16, #tpu.memory_space<vmem>>, %arg6: memref<128x384xbf16, #tpu.memory_space<vmem>>, %arg7: memref<1x384xf32, #tpu.memory_space<vmem>>, %arg8: memref<1x384xf32, #tpu.memory_space<vmem>>, %arg9: memref<256x128xbf16, #tpu.memory_space<vmem>>, %arg10: memref<1x128xf32, #tpu.memory_space<vmem>>, %arg11: memref<128x128xbf16, #tpu.memory_space<vmem>>, %arg12: memref<1x128xf32, #tpu.memory_space<vmem>>, %arg13: memref<16x128xf32, #tpu.memory_space<vmem>>, %arg14: memref<16x128xf32, #tpu.memory_space<vmem>>, %arg15: memref<16x128xbf16, #tpu.memory_space<vmem>>, %arg16: memref<1x16x128xf32, #tpu.memory_space<vmem>>, %arg17: memref<16x1xf32, #tpu.memory_space<vmem>>, %arg18: memref<16x1xf32, #tpu.memory_space<vmem>>) attributes {dimension_semantics = [#tpu.dimension_semantics<arbitrary>, #tpu.dimension_semantics<arbitrary>], iteration_bounds = array<i64: 2, 1>, scalar_prefetch = 0 : i64, scratch_operands = 4 : i64, tpu.core_type = #tpu.core_type<tc>, window_params = [{pipeline_mode = #tpu.pipeline_mode<synchronous>, transform_indices = @transform_0, window_bounds = array<i64: 16, 128>}, {pipeline_mode = #tpu.pipeline_mode<synchronous>, transform_indices = @transform_1, window_bounds = array<i64: 16, 128>}, {pipeline_mode = #tpu.pipeline_mode<synchronous>, transform_indices = @transform_2, window_bounds = array<i64: 16, 16, 128>}, {pipeline_mode = #tpu.pipeline_mode<synchronous>, transform_indices = @transform_3, window_bounds = array<i64: 128, 384>}, {pipeline_mode = #tpu.pipeline_mode<synchronous>, transform_indices = @transform_4, window_bounds = array<i64: 128, 384>}, {pipeline_mode = #tpu.pipeline_mode<synchronous>, transform_indices = @transform_5, window_bounds = array<i64: 1, 384>}, {pipeline_mode = #tpu.pipeline_mode<synchronous>, transform_indices = @transform_6, window_bounds = array<i64: 1, 384>}, {pipeline_mode = #tpu.pipeline_mode<synchronous>, transform_indices = @transform_7, window_bounds = array<i64: 256, 128>}, {pipeline_mode = #tpu.pipeline_mode<synchronous>, transform_indices = @transform_8, window_bounds = array<i64: 1, 128>}, {transform_indices = @transform_9, window_bounds = array<i64: 128, 128>}, {transform_indices = @transform_10, window_bounds = array<i64: 1, 128>}, {pipeline_mode = #tpu.pipeline_mode<synchronous>, transform_indices = @transform_11, window_bounds = array<i64: 16, 128>}, {transform_indices = @transform_12, window_bounds = array<i64: 16, 128>}]} {
    %c0_i32 = arith.constant 0 : i32
    %0 = arith.cmpi eq, %arg0, %c0_i32 : i32
    %c0_i32_0 = arith.constant 0 : i32
    %1 = arith.cmpi eq, %arg1, %c0_i32_0 : i32
    %2 = arith.andi %0, %1 : i1
    %3 = arith.extui %2 : i1 to i32
    %c0_i32_1 = arith.constant 0 : i32
    %4 = arith.cmpi ne, %3, %c0_i32_1 : i32
    scf.if %4 {
      %c0 = arith.constant 0 : index
      %c0_8 = arith.constant 0 : index
      %16 = vector.load %arg2[%c0, %c0_8] : memref<16x128xbf16, #tpu.memory_space<vmem>>, vector<16x128xbf16>
      %c0_9 = arith.constant 0 : index
      %c0_10 = arith.constant 0 : index
      %17 = vector.load %arg3[%c0_9, %c0_10] : memref<16x128xf32, #tpu.memory_space<vmem>>, vector<16x128xf32>
      %c0_11 = arith.constant 0 : index
      %c0_12 = arith.constant 0 : index
      %18 = vector.load %arg5[%c0_11, %c0_12] : memref<128x384xbf16, #tpu.memory_space<vmem>>, vector<128x384xbf16>
      %cst = arith.constant dense<0.000000e+00> : vector<16x384xf32>
      %19 = tpu.matmul %16, %18, %cst {dimension_numbers = #tpu.dot_dimension_numbers<[1], [0], [0], [1], [0, 0, 1, 1], [], []>} : vector<16x128xbf16>, vector<128x384xbf16>, vector<16x384xf32> -> vector<16x384xf32>
      %c0_13 = arith.constant 0 : index
      %c0_14 = arith.constant 0 : index
      %20 = vector.load %arg7[%c0_13, %c0_14] : memref<1x384xf32, #tpu.memory_space<vmem>>, vector<1x384xf32>
      %21 = vector.broadcast %20 : vector<1x384xf32> to vector<16x384xf32>
      %22 = arith.addf %19, %21 : vector<16x384xf32>
      %23 = arith.truncf %17 : vector<16x128xf32> to vector<16x128xbf16>
      %c0_15 = arith.constant 0 : index
      %c0_16 = arith.constant 0 : index
      %24 = vector.load %arg6[%c0_15, %c0_16] : memref<128x384xbf16, #tpu.memory_space<vmem>>, vector<128x384xbf16>
      %cst_17 = arith.constant dense<0.000000e+00> : vector<16x384xf32>
      %25 = tpu.matmul %23, %24, %cst_17 {dimension_numbers = #tpu.dot_dimension_numbers<[1], [0], [0], [1], [0, 0, 1, 1], [], []>} : vector<16x128xbf16>, vector<128x384xbf16>, vector<16x384xf32> -> vector<16x384xf32>
      %c0_18 = arith.constant 0 : index
      %c0_19 = arith.constant 0 : index
      %26 = vector.load %arg8[%c0_18, %c0_19] : memref<1x384xf32, #tpu.memory_space<vmem>>, vector<1x384xf32>
      %27 = vector.broadcast %26 : vector<1x384xf32> to vector<16x384xf32>
      %28 = arith.addf %25, %27 : vector<16x384xf32>
      %29 = vector.extract_strided_slice %22 {offsets = [0, 0], sizes = [16, 128], strides = [1, 1]} : vector<16x384xf32> to vector<16x128xf32>
      %30 = vector.extract_strided_slice %28 {offsets = [0, 0], sizes = [16, 128], strides = [1, 1]} : vector<16x384xf32> to vector<16x128xf32>
      %31 = arith.addf %29, %30 : vector<16x128xf32>
      %32 = arith.negf %31 : vector<16x128xf32>
      %33 = math.exp %32 : vector<16x128xf32>
      %cst_20 = arith.constant 1.000000e+00 : f32
      %34 = vector.broadcast %cst_20 : f32 to vector<16x128xf32>
      %35 = arith.addf %34, %33 : vector<16x128xf32>
      %36 = arith.divf %34, %35 : vector<16x128xf32>
      %37 = vector.extract_strided_slice %22 {offsets = [0, 128], sizes = [16, 128], strides = [1, 1]} : vector<16x384xf32> to vector<16x128xf32>
      %38 = vector.extract_strided_slice %28 {offsets = [0, 128], sizes = [16, 128], strides = [1, 1]} : vector<16x384xf32> to vector<16x128xf32>
      %39 = arith.addf %37, %38 : vector<16x128xf32>
      %40 = arith.negf %39 : vector<16x128xf32>
      %41 = math.exp %40 : vector<16x128xf32>
      %cst_21 = arith.constant 1.000000e+00 : f32
      %42 = vector.broadcast %cst_21 : f32 to vector<16x128xf32>
      %43 = arith.addf %42, %41 : vector<16x128xf32>
      %44 = arith.divf %42, %43 : vector<16x128xf32>
      %45 = vector.extract_strided_slice %22 {offsets = [0, 256], sizes = [16, 128], strides = [1, 1]} : vector<16x384xf32> to vector<16x128xf32>
      %46 = vector.extract_strided_slice %28 {offsets = [0, 256], sizes = [16, 128], strides = [1, 1]} : vector<16x384xf32> to vector<16x128xf32>
      %47 = arith.mulf %36, %46 : vector<16x128xf32>
      %48 = arith.addf %45, %47 : vector<16x128xf32>
      %49 = math.tanh %48 : vector<16x128xf32>
      %cst_22 = arith.constant 1.000000e+00 : f32
      %50 = vector.broadcast %cst_22 : f32 to vector<16x128xf32>
      %51 = arith.subf %50, %44 : vector<16x128xf32>
      %52 = arith.mulf %51, %49 : vector<16x128xf32>
      %53 = arith.mulf %44, %17 : vector<16x128xf32>
      %54 = arith.addf %52, %53 : vector<16x128xf32>
      %c0_23 = arith.constant 0 : index
      %c0_24 = arith.constant 0 : index
      %55 = vector.load %arg13[%c0_23, %c0_24] : memref<16x128xf32, #tpu.memory_space<vmem>>, vector<16x128xf32>
      tpu.vector_store %arg13[%c0_23, %c0_24], %54 {strides = array<i32>} : memref<16x128xf32, #tpu.memory_space<vmem>>, vector<16x128xf32>,
      %c0_25 = arith.constant 0 : index
      %c0_26 = arith.constant 0 : index
      %c0_27 = arith.constant 0 : index
      %56 = vector.load %arg4[%c0_25, %c0_26, %c0_27] : memref<16x16x128xbf16, #tpu.memory_space<vmem>>, vector<16x16x128xbf16>
      %57 = vector.shape_cast %54 : vector<16x128xf32> to vector<16x1x128xf32>
      %58 = arith.extf %56 : vector<16x16x128xbf16> to vector<16x16x128xf32>
      %59 = vector.broadcast %57 : vector<16x1x128xf32> to vector<16x16x128xf32>
      %60 = arith.mulf %58, %59 : vector<16x16x128xf32>
      %cst_28 = arith.constant dense<0.000000e+00> : vector<16x16xf32>
      %61 = vector.multi_reduction <add>, %60, %cst_28 [2] : vector<16x16x128xf32> to vector<16x16xf32>
      %62 = tpu.iota {dimensions = array<i32: 1>} : vector<16x16xi32>
      %c8_i32 = arith.constant 8 : i32
      %63 = vector.broadcast %c8_i32 : i32 to vector<16x16xi32>
      %64 = arith.cmpi slt, %62, %63 : vector<16x16xi32>
      %cst_29 = arith.constant -1.000000e+30 : f32
      %65 = vector.broadcast %cst_29 : f32 to vector<16x16xf32>
      %66 = arith.select %64, %61, %65 : vector<16x16xi1>, vector<16x16xf32>
      %cst_30 = arith.constant dense<0xFF800000> : vector<16xf32>
      %67 = vector.multi_reduction <maximumf>, %66, %cst_30 [1] : vector<16x16xf32> to vector<16xf32>
      %68 = vector.shape_cast %67 : vector<16xf32> to vector<16x1xf32>
      %69 = vector.broadcast %68 : vector<16x1xf32> to vector<16x16xf32>
      %70 = arith.subf %66, %69 : vector<16x16xf32>
      %71 = math.exp %70 : vector<16x16xf32>
      %cst_31 = arith.constant dense<0.000000e+00> : vector<16xf32>
      %72 = vector.multi_reduction <add>, %71, %cst_31 [1] : vector<16x16xf32> to vector<16xf32>
      %73 = vector.shape_cast %72 : vector<16xf32> to vector<16x1xf32>
      %74 = tpu.reciprocal %73 {approx = true} : vector<16x1xf32> -> vector<16x1xf32>
      %75 = vector.broadcast %74 : vector<16x1xf32> to vector<16x16xf32>
      %76 = arith.mulf %71, %75 : vector<16x16xf32>
      %77 = vector.shape_cast %76 : vector<16x16xf32> to vector<16x16x1xf32>
      %78 = arith.extf %56 : vector<16x16x128xbf16> to vector<16x16x128xf32>
      %79 = vector.broadcast %77 : vector<16x16x1xf32> to vector<16x16x128xf32>
      %80 = arith.mulf %79, %78 : vector<16x16x128xf32>
      %cst_32 = arith.constant dense<0.000000e+00> : vector<16x128xf32>
      %81 = vector.multi_reduction <add>, %80, %cst_32 [1] : vector<16x16x128xf32> to vector<16x128xf32>
      %82 = arith.truncf %54 : vector<16x128xf32> to vector<16x128xbf16>
      %83 = arith.truncf %81 : vector<16x128xf32> to vector<16x128xbf16>
      %84 = tpu.concatenate %82, %83 in 1 : vector<16x128xbf16>, vector<16x128xbf16> -> vector<16x256xbf16>
      %c0_33 = arith.constant 0 : index
      %c0_34 = arith.constant 0 : index
      %85 = vector.load %arg9[%c0_33, %c0_34] : memref<256x128xbf16, #tpu.memory_space<vmem>>, vector<256x128xbf16>
      %cst_35 = arith.constant dense<0.000000e+00> : vector<16x128xf32>
      %86 = tpu.matmul %84, %85, %cst_35 {dimension_numbers = #tpu.dot_dimension_numbers<[1], [0], [0], [1], [0, 0, 1, 1], [], []>} : vector<16x256xbf16>, vector<256x128xbf16>, vector<16x128xf32> -> vector<16x128xf32>
      %c0_36 = arith.constant 0 : index
      %c0_37 = arith.constant 0 : index
      %87 = vector.load %arg10[%c0_36, %c0_37] : memref<1x128xf32, #tpu.memory_space<vmem>>, vector<1x128xf32>
      %88 = vector.broadcast %87 : vector<1x128xf32> to vector<16x128xf32>
      %89 = arith.addf %86, %88 : vector<16x128xf32>
      %90 = math.tanh %89 : vector<16x128xf32>
      %91 = arith.truncf %90 : vector<16x128xf32> to vector<16x128xbf16>
      %c0_38 = arith.constant 0 : index
      %c0_39 = arith.constant 0 : index
      %92 = vector.load %arg15[%c0_38, %c0_39] : memref<16x128xbf16, #tpu.memory_space<vmem>>, vector<16x128xbf16>
      tpu.vector_store %arg15[%c0_38, %c0_39], %91 {strides = array<i32>} : memref<16x128xbf16, #tpu.memory_space<vmem>>, vector<16x128xbf16>,
      %cst_40 = arith.constant 0xFF800000 : f32
      %93 = vector.broadcast %cst_40 : f32 to vector<16x1xf32>
      %c0_41 = arith.constant 0 : index
      %c0_42 = arith.constant 0 : index
      %94 = vector.load %arg17[%c0_41, %c0_42] : memref<16x1xf32, #tpu.memory_space<vmem>>, vector<16x1xf32>
      tpu.vector_store %arg17[%c0_41, %c0_42], %93 {strides = array<i32>} : memref<16x1xf32, #tpu.memory_space<vmem>>, vector<16x1xf32>,
      %cst_43 = arith.constant 0.000000e+00 : f32
      %95 = vector.broadcast %cst_43 : f32 to vector<16x1xf32>
      %c0_44 = arith.constant 0 : index
      %c0_45 = arith.constant 0 : index
      %96 = vector.load %arg18[%c0_44, %c0_45] : memref<16x1xf32, #tpu.memory_space<vmem>>, vector<16x1xf32>
      tpu.vector_store %arg18[%c0_44, %c0_45], %95 {strides = array<i32>} : memref<16x1xf32, #tpu.memory_space<vmem>>, vector<16x1xf32>,
    } else {
    }
    %c0_i32_2 = arith.constant 0 : i32
    %5 = arith.cmpi eq, %arg0, %c0_i32_2 : i32
    %6 = arith.extui %5 : i1 to i32
    %c0_i32_3 = arith.constant 0 : i32
    %7 = arith.cmpi ne, %6, %c0_i32_3 : i32
    scf.if %7 {
      %c0 = arith.constant 0 : index
      %c0_8 = arith.constant 0 : index
      %16 = vector.load %arg15[%c0, %c0_8] : memref<16x128xbf16, #tpu.memory_space<vmem>>, vector<16x128xbf16>
      %c0_9 = arith.constant 0 : index
      %c0_10 = arith.constant 0 : index
      %17 = vector.load %arg11[%c0_9, %c0_10] : memref<128x128xbf16, #tpu.memory_space<vmem>>, vector<128x128xbf16>
      %cst = arith.constant dense<0.000000e+00> : vector<16x128xf32>
      %18 = tpu.matmul %16, %17, %cst {dimension_numbers = #tpu.dot_dimension_numbers<[1], [0], [0], [1], [0, 0, 1, 1], [], []>} : vector<16x128xbf16>, vector<128x128xbf16>, vector<16x128xf32> -> vector<16x128xf32>
      %c0_11 = arith.constant 0 : index
      %c0_12 = arith.constant 0 : index
      %19 = vector.load %arg12[%c0_11, %c0_12] : memref<1x128xf32, #tpu.memory_space<vmem>>, vector<1x128xf32>
      %20 = vector.broadcast %19 : vector<1x128xf32> to vector<16x128xf32>
      %21 = arith.addf %18, %20 : vector<16x128xf32>
      %22 = arith.index_cast %arg1 : i32 to index
      %c0_13 = arith.constant 0 : index
      %c0_14 = arith.constant 0 : index
      %23 = vector.load %arg16[%22, %c0_13, %c0_14] : memref<1x16x128xf32, #tpu.memory_space<vmem>>, vector<1x16x128xf32>
      %24 = vector.shape_cast %23 : vector<1x16x128xf32> to vector<16x128xf32>
      %25 = vector.shape_cast %21 : vector<16x128xf32> to vector<1x16x128xf32>
      tpu.vector_store %arg16[%22, %c0_13, %c0_14], %25 {strides = array<i32>} : memref<1x16x128xf32, #tpu.memory_space<vmem>>, vector<1x16x128xf32>,
      %cst_15 = arith.constant dense<0xFF800000> : vector<16xf32>
      %26 = vector.multi_reduction <maximumf>, %21, %cst_15 [1] : vector<16x128xf32> to vector<16xf32>
      %27 = vector.shape_cast %26 : vector<16xf32> to vector<16x1xf32>
      %c0_16 = arith.constant 0 : index
      %c0_17 = arith.constant 0 : index
      %28 = vector.load %arg17[%c0_16, %c0_17] : memref<16x1xf32, #tpu.memory_space<vmem>>, vector<16x1xf32>
      %29 = arith.maximumf %28, %27 : vector<16x1xf32>
      %c0_18 = arith.constant 0 : index
      %c0_19 = arith.constant 0 : index
      %30 = vector.load %arg18[%c0_18, %c0_19] : memref<16x1xf32, #tpu.memory_space<vmem>>, vector<16x1xf32>
      %c0_20 = arith.constant 0 : index
      %c0_21 = arith.constant 0 : index
      %31 = vector.load %arg17[%c0_20, %c0_21] : memref<16x1xf32, #tpu.memory_space<vmem>>, vector<16x1xf32>
      %32 = arith.subf %31, %29 : vector<16x1xf32>
      %33 = math.exp %32 : vector<16x1xf32>
      %34 = arith.mulf %30, %33 : vector<16x1xf32>
      %35 = vector.broadcast %29 : vector<16x1xf32> to vector<16x128xf32>
      %36 = arith.subf %21, %35 : vector<16x128xf32>
      %37 = math.exp %36 : vector<16x128xf32>
      %cst_22 = arith.constant dense<0.000000e+00> : vector<16xf32>
      %38 = vector.multi_reduction <add>, %37, %cst_22 [1] : vector<16x128xf32> to vector<16xf32>
      %39 = vector.shape_cast %38 : vector<16xf32> to vector<16x1xf32>
      %40 = arith.addf %34, %39 : vector<16x1xf32>
      %c0_23 = arith.constant 0 : index
      %c0_24 = arith.constant 0 : index
      %41 = vector.load %arg18[%c0_23, %c0_24] : memref<16x1xf32, #tpu.memory_space<vmem>>, vector<16x1xf32>
      tpu.vector_store %arg18[%c0_23, %c0_24], %40 {strides = array<i32>} : memref<16x1xf32, #tpu.memory_space<vmem>>, vector<16x1xf32>,
      %c0_25 = arith.constant 0 : index
      %c0_26 = arith.constant 0 : index
      %42 = vector.load %arg17[%c0_25, %c0_26] : memref<16x1xf32, #tpu.memory_space<vmem>>, vector<16x1xf32>
      tpu.vector_store %arg17[%c0_25, %c0_26], %29 {strides = array<i32>} : memref<16x1xf32, #tpu.memory_space<vmem>>, vector<16x1xf32>,
    } else {
    }
    %c1_i32 = arith.constant 1 : i32
    %8 = arith.cmpi eq, %arg0, %c1_i32 : i32
    %c0_i32_4 = arith.constant 0 : i32
    %9 = arith.cmpi eq, %arg1, %c0_i32_4 : i32
    %10 = arith.andi %8, %9 : i1
    %11 = arith.extui %10 : i1 to i32
    %c0_i32_5 = arith.constant 0 : i32
    %12 = arith.cmpi ne, %11, %c0_i32_5 : i32
    scf.if %12 {
      %c0 = arith.constant 0 : index
      %c0_8 = arith.constant 0 : index
      %16 = vector.load %arg18[%c0, %c0_8] : memref<16x1xf32, #tpu.memory_space<vmem>>, vector<16x1xf32>
      %cst = arith.constant 1.000000e+00 : f32
      %17 = vector.broadcast %cst : f32 to vector<16x1xf32>
      %18 = arith.divf %17, %16 : vector<16x1xf32>
      %c0_9 = arith.constant 0 : index
      %c0_10 = arith.constant 0 : index
      %19 = vector.load %arg18[%c0_9, %c0_10] : memref<16x1xf32, #tpu.memory_space<vmem>>, vector<16x1xf32>
      tpu.vector_store %arg18[%c0_9, %c0_10], %18 {strides = array<i32>} : memref<16x1xf32, #tpu.memory_space<vmem>>, vector<16x1xf32>,
    } else {
    }
    %c1_i32_6 = arith.constant 1 : i32
    %13 = arith.cmpi eq, %arg0, %c1_i32_6 : i32
    %14 = arith.extui %13 : i1 to i32
    %c0_i32_7 = arith.constant 0 : i32
    %15 = arith.cmpi ne, %14, %c0_i32_7 : i32
    scf.if %15 {
      %16 = arith.index_cast %arg1 : i32 to index
      %c0 = arith.constant 0 : index
      %c0_8 = arith.constant 0 : index
      %17 = vector.load %arg16[%16, %c0, %c0_8] : memref<1x16x128xf32, #tpu.memory_space<vmem>>, vector<1x16x128xf32>
      %18 = vector.shape_cast %17 : vector<1x16x128xf32> to vector<16x128xf32>
      %c0_9 = arith.constant 0 : index
      %c0_10 = arith.constant 0 : index
      %19 = vector.load %arg17[%c0_9, %c0_10] : memref<16x1xf32, #tpu.memory_space<vmem>>, vector<16x1xf32>
      %20 = vector.broadcast %19 : vector<16x1xf32> to vector<16x128xf32>
      %21 = arith.subf %18, %20 : vector<16x128xf32>
      %22 = math.exp %21 : vector<16x128xf32>
      %c0_11 = arith.constant 0 : index
      %c0_12 = arith.constant 0 : index
      %23 = vector.load %arg18[%c0_11, %c0_12] : memref<16x1xf32, #tpu.memory_space<vmem>>, vector<16x1xf32>
      %24 = vector.broadcast %23 : vector<16x1xf32> to vector<16x128xf32>
      %25 = arith.mulf %22, %24 : vector<16x128xf32>
      %c0_13 = arith.constant 0 : index
      %c0_14 = arith.constant 0 : index
      %26 = vector.load %arg14[%c0_13, %c0_14] : memref<16x128xf32, #tpu.memory_space<vmem>>, vector<16x128xf32>
      tpu.vector_store %arg14[%c0_13, %c0_14], %25 {strides = array<i32>} : memref<16x128xf32, #tpu.memory_space<vmem>>, vector<16x128xf32>,
    } else {
    }
    return
  }
  func.func @transform_0(%arg0: i32, %arg1: i32) -> (i32, i32) {
    %c0_i32 = arith.constant 0 : i32
    %c0_i32_0 = arith.constant 0 : i32
    %c0_i32_1 = arith.constant 0 : i32
    return %c0_i32, %c0_i32_0 : i32, i32
  }
  func.func @transform_1(%arg0: i32, %arg1: i32) -> (i32, i32) {
    %c0_i32 = arith.constant 0 : i32
    %c0_i32_0 = arith.constant 0 : i32
    %c0_i32_1 = arith.constant 0 : i32
    return %c0_i32, %c0_i32_0 : i32, i32
  }
  func.func @transform_2(%arg0: i32, %arg1: i32) -> (i32, i32, i32) {
    %c0_i32 = arith.constant 0 : i32
    %c0_i32_0 = arith.constant 0 : i32
    %c0_i32_1 = arith.constant 0 : i32
    %c0_i32_2 = arith.constant 0 : i32
    return %c0_i32, %c0_i32_0, %c0_i32_1 : i32, i32, i32
  }
  func.func @transform_3(%arg0: i32, %arg1: i32) -> (i32, i32) {
    %c0_i32 = arith.constant 0 : i32
    %c0_i32_0 = arith.constant 0 : i32
    %c0_i32_1 = arith.constant 0 : i32
    return %c0_i32, %c0_i32_0 : i32, i32
  }
  func.func @transform_4(%arg0: i32, %arg1: i32) -> (i32, i32) {
    %c0_i32 = arith.constant 0 : i32
    %c0_i32_0 = arith.constant 0 : i32
    %c0_i32_1 = arith.constant 0 : i32
    return %c0_i32, %c0_i32_0 : i32, i32
  }
  func.func @transform_5(%arg0: i32, %arg1: i32) -> (i32, i32) {
    %c0_i32 = arith.constant 0 : i32
    %c0_i32_0 = arith.constant 0 : i32
    %c0_i32_1 = arith.constant 0 : i32
    return %c0_i32, %c0_i32_0 : i32, i32
  }
  func.func @transform_6(%arg0: i32, %arg1: i32) -> (i32, i32) {
    %c0_i32 = arith.constant 0 : i32
    %c0_i32_0 = arith.constant 0 : i32
    %c0_i32_1 = arith.constant 0 : i32
    return %c0_i32, %c0_i32_0 : i32, i32
  }
  func.func @transform_7(%arg0: i32, %arg1: i32) -> (i32, i32) {
    %c0_i32 = arith.constant 0 : i32
    %c0_i32_0 = arith.constant 0 : i32
    %c0_i32_1 = arith.constant 0 : i32
    return %c0_i32, %c0_i32_0 : i32, i32
  }
  func.func @transform_8(%arg0: i32, %arg1: i32) -> (i32, i32) {
    %c0_i32 = arith.constant 0 : i32
    %c0_i32_0 = arith.constant 0 : i32
    %c0_i32_1 = arith.constant 0 : i32
    return %c0_i32, %c0_i32_0 : i32, i32
  }
  func.func @transform_9(%arg0: i32, %arg1: i32) -> (i32, i32) {
    %c1_i32 = arith.constant 1 : i32
    %0 = arith.subi %c1_i32, %arg0 : i32
    %1 = arith.muli %arg1, %0 : i32
    %c0_i32 = arith.constant 0 : i32
    %c0_i32_0 = arith.constant 0 : i32
    return %c0_i32, %1 : i32, i32
  }
  func.func @transform_10(%arg0: i32, %arg1: i32) -> (i32, i32) {
    %c1_i32 = arith.constant 1 : i32
    %0 = arith.subi %c1_i32, %arg0 : i32
    %1 = arith.muli %arg1, %0 : i32
    %c0_i32 = arith.constant 0 : i32
    %c0_i32_0 = arith.constant 0 : i32
    return %c0_i32, %1 : i32, i32
  }
  func.func @transform_11(%arg0: i32, %arg1: i32) -> (i32, i32) {
    %c0_i32 = arith.constant 0 : i32
    %c0_i32_0 = arith.constant 0 : i32
    %c0_i32_1 = arith.constant 0 : i32
    return %c0_i32, %c0_i32_0 : i32, i32
  }
  func.func @transform_12(%arg0: i32, %arg1: i32) -> (i32, i32) {
    %0 = arith.muli %arg1, %arg0 : i32
    %c0_i32 = arith.constant 0 : i32
    %c0_i32_0 = arith.constant 0 : i32
    return %c0_i32, %0 : i32, i32
  }
}

</mosaic_0001>

<bundles_post_ra>
// kernel: tpu_custom_call.1
= control target key start
LH: loop header
LB: loop body
LE: loop exit
PB: predicated region body
PF: predicated region fallthrough
CT: control target
= control target key end

     0   :  { %s4406_s0 = inlined_call_operand.hbm [shape: bf16[16,128], index: 0, kind: input, shape index: {}]   ;;  %s4407_s1 = inlined_call_operand.hbm [shape: f32[16,128], index: 1, kind: input, shape index: {}]   ;;  %s4408_s2 = inlined_call_operand.hbm [shape: bf16[16,16,128], index: 2, kind: input, shape index: {}]   ;;  %s4409_s3 = inlined_call_operand.hbm [shape: bf16[128,384], index: 3, kind: input, shape index: {}]   ;;  %s4410_s4 = inlined_call_operand.hbm [shape: bf16[128,384], index: 4, kind: input, shape index: {}]   ;;  %s4411_s5 = inlined_call_operand.vmem [shape: f32[1,384], index: 5, kind: input, shape index: {}]   ;;  %s4412_s6 = inlined_call_operand.vmem [shape: f32[1,384], index: 6, kind: input, shape index: {}]   ;;  %s4413_s7 = inlined_call_operand.hbm [shape: bf16[256,128], index: 7, kind: input, shape index: {}]   ;;  %s4414_s8 = inlined_call_operand.vmem [shape: f32[1,128], index: 8, kind: input, shape index: {}]   ;;  %s4415_s9 = inlined_call_operand.hbm [shape: bf16[128,128], index: 9, kind: input, shape index: {}]   ;;  %s4416_s10 = inlined_call_operand.vmem [shape: f32[1,128], index: 10, kind: input, shape index: {}]   ;;  %s4417_s11 = inlined_call_operand.hbm [shape: f32[16,128], index: 11, kind: output, shape index: {0}]   ;;  %s4418_s12 = inlined_call_operand.hbm [shape: f32[16,128], index: 12, kind: output, shape index: {1}]  }
   0x1   :  { %4455 = sst [smem:[#allocation30_spill]] %s4406_s0 }
   0x2   :  { %4456 = sst [smem:[#allocation31_spill]] %s4407_s1 }
   0x3   :  { %4457 = sst [smem:[#allocation32_spill]] %s4417_s11 }
   0x4   :  { %4458 = sst [smem:[#allocation33_spill]] %s4418_s12 }
   0x5   :  { %18 = vsyncpa [#allocation7], 0 }
   0x6   :  { %19 = vsyncpa [#allocation10], 0 }
   0x7   :  { %20 = vsyncpa [#allocation13], 0 }
   0x8   :  { %21 = vsyncpa [#allocation16], 0 }
   0x9   :  { %22 = vsyncpa [#allocation8], 0 }
   0xa   :  { %23 = vsyncpa [#allocation20], 0 }
   0xb   :  { %25 = vsyncpa [#allocation20 + $0x1], 0  ;;  %s3676_s21 = smov 0   ;;  %s3678_s22 = smov 0  }
   0xc   :  { %s3680_s23 = smov 0  }
   0xd LB: > { %4459 = sst [smem:[#allocation28_spill]] %s3579_s22  ;;  %s3692_s24 = sadd.s32 4294967295, %s3583_s23   ;;  %s3583_s23 = sphi %s3680_s23, %s31_s23   ;;  %s3579_s22 = sphi %s3678_s22, %s4515_s22   ;;  %s3575_s21 = sphi %s3676_s21, %s4514_s21  }
   0xe   : > { %s43_s26 = sadd.s32 1, %s3579_s22  ;;  %p2702_p0 = scmp.ge.s32.totalorder %s3583_s23, 1 }
   0xf   : > { %p45_p1 = scmp.ge.s32.totalorder %s43_s26, 2  ;;  %p346_p2 = scmp.lt.s32.totalorder %s3583_s23, 3 }
  0x10   : > { %p4419_p3 = scmp.eq.s32.totalorder %s3692_s24, 0  ;;  %s3585_s28 = smov [#allocation6]  }
  0x11   : > { %s4517_s26 = smov (%p45_p1, %s43_s26), 0  ;;  %p3701_p4 = pnand %p2702_p0, %p346_p2 }
  0x12   : > { %4460 = sst [smem:[#allocation29_spill]] %s4517_s26  ;;  %s358_s29 = sshll.u32 %s3585_s28, 4  ;;  %s359_s29 = int_to_ptr.vmem [resolvable:$true] %s358_s29 }
  0x13   : > { %s4461_s27 = scalar_select %p3701_p4, 1, 0 }
  0x14   : > { %p3047_p5 = pneg %p3701_p4  ;;  %s3586_s13 = smov [#allocation9]  }
  0x15   : > { %s371_s14 = sshll.u32 %s3586_s13, 4  ;;  %s4463_s0 = sld [smem:[#allocation30_spill]]  ;;  %s372_s14 = int_to_ptr.vmem [resolvable:$true] %s371_s14 }
  0x16   : > { %p3710_p7 = pnand %p4419_p3, %p3047_p5 }
  0x18   : > { %p3722_p9 = pneg %p3710_p7 }
  0x1b   : > { %s3285_s17 = scalar_lea.hbm %s4463_s0, 128 }
  0x1c   : > { %p3286_p8 = scmp.ne.s32.totalorder %s4463_s0, %s3285_s17  ;;  %p3292_p12 = scmp.lt.u32.totalorder %s3285_s17, %s4463_s0 }
  0x1e   : > { %p3288_p10 = pnand %p3722_p9, %p3286_p8 }
  0x20   : > { %p3289_p11 = pneg %p3288_p10 }
  0x22   : > { %p3294_p13 = pnand %p3292_p12, %p3289_p11 }
  0x24   : > { %3297 = shalt.err (!%p3294_p13)
}
  0x25   : > { %s3298_s13 = scalar_lea.vmem %s359_s29, 128  ;;  %p3306_p5 = scmp.lt.s32.totalorder %s359_s29, %s359_s29 }
  0x26   : > { %p3299_p0 = scmp.ne.s32.totalorder %s359_s29, %s3298_s13  ;;  %p3307_p6 = scmp.lt.s32.totalorder %s3298_s13, %s3298_s13 }
  0x28   : > { %p3301_p1 = pnand %p3299_p0, %p3722_p9  ;;  %p3308_p3 = por %p3307_p6, %p3306_p5 }
  0x2a   : > { %p3302_p2 = pneg %p3301_p1 }
  0x2c   : > { %p3309_p4 = pnand %p3308_p3, %p3302_p2 }
  0x2e   : > { %3312 = shalt.err (!%p3309_p4)
}
  0x2f   : > { %s4423_s15 = smov 64   ;;  %s4425_s16 = smov 4  }
  0x30   : > { %3050 = dma.hbm_to_vmem [thread:$0]  (!%p3710_p7), %s4463_s0, 128, %s359_s29, [#allocation7], %s4423_s15, %s4423_s15, %s4425_s16  }
  0x31   : > { %s4465_s1 = sld [smem:[#allocation31_spill]] }
  0x37   : > { %s3313_s28 = scalar_lea.hbm %s4465_s1, 256 }
  0x38   : > { %p3314_p3 = scmp.ne.s32.totalorder %s4465_s1, %s3313_s28  ;;  %p3320_p8 = scmp.lt.u32.totalorder %s3313_s28, %s4465_s1 }
  0x3a   : > { %p3316_p4 = pnand %p3314_p3, %p3722_p9 }
  0x3c   : > { %p3317_p6 = pneg %p3316_p4 }
  0x3e   : > { %p3322_p10 = pnand %p3320_p8, %p3317_p6 }
  0x40   : > { %3325 = shalt.err (!%p3322_p10)
}
  0x41   : > { %s3326_s25 = scalar_lea.vmem %s372_s14, 256  ;;  %p3334_p0 = scmp.lt.s32.totalorder %s372_s14, %s372_s14 }
  0x42   : > { %p3327_p11 = scmp.ne.s32.totalorder %s372_s14, %s3326_s25  ;;  %p3335_p1 = scmp.lt.s32.totalorder %s3326_s25, %s3326_s25 }
  0x44   : > { %p3329_p12 = pnand %p3327_p11, %p3722_p9  ;;  %p3336_p2 = por %p3335_p1, %p3334_p0 }
  0x46   : > { %p3330_p13 = pneg %p3329_p12 }
  0x48   : > { %p3337_p5 = pnand %p3336_p2, %p3330_p13 }
  0x4a   : > { %3340 = shalt.err (!%p3337_p5)
}
  0x4b   : > { %s3589_s26 = smov 128   ;;  %s3590_s29 = smov 8  }
  0x4c   : > { %3053 = dma.hbm_to_vmem [thread:$0]  (!%p3710_p7), %s4465_s1, 256, %s372_s14, [#allocation10], %s3589_s26, %s3589_s26, %s3590_s29  }
  0x4d   : > { %s3591_s17 = smov [#allocation12]   ;;  %s3341_s13 = scalar_lea.hbm %s4409_s3, 3072 }
  0x4e   : > { %s397_s18 = sshll.u32 %s3591_s17, 4  ;;  %p3342_p3 = scmp.ne.s32.totalorder %s4409_s3, %s3341_s13  ;;  %s398_s18 = int_to_ptr.vmem [resolvable:$true] %s397_s18 }
  0x4f   : > { %p3348_p8 = scmp.lt.u32.totalorder %s3341_s13, %s4409_s3 }
  0x50   : > { %p3344_p4 = pnand %p3342_p3, %p3722_p9 }
  0x52   : > { %p3345_p6 = pneg %p3344_p4 }
  0x54   : > { %p3350_p10 = pnand %p3348_p8, %p3345_p6 }
  0x56   : > { %3353 = shalt.err (!%p3350_p10)
}
  0x57   : > { %s3354_s14 = scalar_lea.vmem %s398_s18, 3072  ;;  %p3362_p0 = scmp.lt.s32.totalorder %s398_s18, %s398_s18 }
  0x58   : > { %p3355_p11 = scmp.ne.s32.totalorder %s398_s18, %s3354_s14  ;;  %p3363_p1 = scmp.lt.s32.totalorder %s3354_s14, %s3354_s14 }
  0x5a   : > { %p3357_p12 = pnand %p3355_p11, %p3722_p9  ;;  %p3364_p2 = por %p3363_p1, %p3362_p0 }
  0x5c   : > { %p3358_p13 = pneg %p3357_p12 }
  0x5e   : > { %p3365_p5 = pnand %p3364_p2, %p3358_p13 }
  0x60   : > { %3368 = shalt.err (!%p3365_p5)
}
  0x61   : > { %s3592_s15 = smov 192   ;;  %s3593_s26 = smov 12  }
  0x62   : > { %3059 = dma.hbm_to_vmem [thread:$0]  (!%p3710_p7), %s4409_s3, 3072, %s398_s18, [#allocation13], %s3592_s15, %s3592_s15, %s3593_s26  }
  0x63   : > { %s3594_s29 = smov [#allocation11]   ;;  %s3595_s22 = smov [#allocation14]  }
  0x64   : > { %s384_s12 = sshll.u32 %s3594_s29, 4  ;;  %s410_s17 = sshll.u32 %s3595_s22, 4  ;;  %s385_s12 = int_to_ptr.vmem [resolvable:$true] %s384_s12  ;;  %s411_s17 = int_to_ptr.vmem [resolvable:$true] %s410_s17 }
  0x65   : > { %s3369_s13 = scalar_lea.hbm %s4408_s2, 2048 }
  0x66   : > { %p3370_p3 = scmp.ne.s32.totalorder %s4408_s2, %s3369_s13  ;;  %p3376_p8 = scmp.lt.u32.totalorder %s3369_s13, %s4408_s2 }
  0x68   : > { %p3372_p4 = pnand %p3370_p3, %p3722_p9 }
  0x6a   : > { %p3373_p6 = pneg %p3372_p4 }
  0x6c   : > { %p3378_p10 = pnand %p3376_p8, %p3373_p6 }
  0x6e   : > { %3381 = shalt.err (!%p3378_p10)
}
  0x6f   : > { %s3382_s18 = scalar_lea.vmem %s385_s12, 2048  ;;  %p3390_p0 = scmp.lt.s32.totalorder %s385_s12, %s385_s12 }
  0x70   : > { %p3383_p11 = scmp.ne.s32.totalorder %s385_s12, %s3382_s18  ;;  %p3391_p1 = scmp.lt.s32.totalorder %s3382_s18, %s3382_s18 }
  0x72   : > { %p3385_p12 = pnand %p3383_p11, %p3722_p9  ;;  %p3392_p2 = por %p3391_p1, %p3390_p0 }
  0x74   : > { %p3386_p13 = pneg %p3385_p12 }
  0x76   : > { %p3393_p5 = pnand %p3392_p2, %p3386_p13 }
  0x78   : > { %3396 = shalt.err (!%p3393_p5)
}
  0x79   : > { %s4466_s0 = smov 4   ;;  %s4467_s16 = smov 64  }
  0x7a   : > { %3056 = dma.hbm_to_vmem [thread:$0]  (!%p3710_p7), %s4408_s2, 2048, %s385_s12, [#allocation10], %s4467_s16, %s4467_s16, %s4466_s0  }
  0x7b   : > { %s3397_s19 = scalar_lea.hbm %s4410_s4, 3072 }
  0x7c   : > { %p3398_p3 = scmp.ne.s32.totalorder %s4410_s4, %s3397_s19  ;;  %p3404_p8 = scmp.lt.u32.totalorder %s3397_s19, %s4410_s4 }
  0x7e   : > { %p3400_p4 = pnand %p3398_p3, %p3722_p9 }
  0x80   : > { %p3401_p6 = pneg %p3400_p4 }
  0x82   : > { %p3406_p10 = pnand %p3404_p8, %p3401_p6 }
  0x84   : > { %3409 = shalt.err (!%p3406_p10)
}
  0x85   : > { %s3410_s18 = scalar_lea.vmem %s411_s17, 3072  ;;  %p3418_p0 = scmp.lt.s32.totalorder %s411_s17, %s411_s17 }
  0x86   : > { %p3411_p11 = scmp.ne.s32.totalorder %s411_s17, %s3410_s18  ;;  %p3419_p1 = scmp.lt.s32.totalorder %s3410_s18, %s3410_s18 }
  0x88   : > { %p3413_p12 = pnand %p3411_p11, %p3722_p9  ;;  %p3420_p2 = por %p3419_p1, %p3418_p0 }
  0x8a   : > { %p3414_p13 = pneg %p3413_p12 }
  0x8c   : > { %p3421_p5 = pnand %p3420_p2, %p3414_p13 }
  0x8e   : > { %3424 = shalt.err (!%p3421_p5)
}
  0x8f   : > { %3062 = dma.hbm_to_vmem [thread:$0]  (!%p3710_p7), %s4410_s4, 3072, %s411_s17, [#allocation13], %s3592_s15, %s3592_s15, %s3593_s26  }
  0x90   : > { %s3596_s11 = smov [#allocation15]   ;;  %s3425_s28 = scalar_lea.hbm %s4413_s7, 2048 }
  0x91   : > { %s429_s29 = sshll.u32 %s3596_s11, 4  ;;  %p3426_p6 = scmp.ne.s32.totalorder %s4413_s7, %s3425_s28  ;;  %s430_s29 = int_to_ptr.vmem [resolvable:$true] %s429_s29 }
  0x92   : > { %p3432_p11 = scmp.lt.u32.totalorder %s3425_s28, %s4413_s7 }
  0x93   : > { %p3428_p8 = pnand %p3426_p6, %p3722_p9 }
  0x95   : > { %p3429_p10 = pneg %p3428_p8 }
  0x97   : > { %p3434_p12 = pnand %p3432_p11, %p3429_p10 }
  0x99   : > { %3437 = shalt.err (!%p3434_p12)
}
  0x9a   : > { %s3438_s15 = scalar_lea.vmem %s430_s29, 2048  ;;  %p3446_p2 = scmp.lt.s32.totalorder %s430_s29, %s430_s29 }
  0x9b   : > { %p3439_p13 = scmp.ne.s32.totalorder %s430_s29, %s3438_s15  ;;  %p3447_p5 = scmp.lt.s32.totalorder %s3438_s15, %s3438_s15 }
  0x9d   : > { %p3441_p0 = pnand %p3439_p13, %p3722_p9  ;;  %p3448_p4 = por %p3447_p5, %p3446_p2 }
  0x9f   : > { %p3442_p1 = pneg %p3441_p0 }
  0xa1   : > { %p3449_p3 = pnand %p3448_p4, %p3442_p1 }
  0xa3   : > { %3452 = shalt.err (!%p3449_p3)
}
  0xa4   : > { %3065 = dma.hbm_to_vmem [thread:$0]  (!%p3710_p7), %s4413_s7, 2048, %s430_s29, [#allocation16], %s4467_s16, %s4467_s16, %s4466_s0  }
  0xa5   : > { %s446_s20 = sand.u32 1, %s3583_s23   ;;  %s3597_s12 = smov [#allocation17]  }
  0xa6   : > { %s458_s1 = sshll.u32 %s3597_s12, 4  ;;  %p4468_p9 = scmp.lt.s32.totalorder %s3583_s23, 2  ;;  %s459_s1 = int_to_ptr.vmem [resolvable:$true] %s458_s1 }
  0xa7   : > { %p4469_p6 = scmp.eq.s32.totalorder %s3583_s23, 0  ;;  %s447_s30 = scalar_lea.sflag [#allocation7], %s446_s20 }
  0xa8   : > { %s3453_s28 = scalar_lea.hbm %s4415_s9, 1024 }
  0xa9   : > { %p3850_p4 = pnand %p4469_p6, %p4468_p9  ;;  %p3454_p7 = scmp.ne.s32.totalorder %s4415_s9, %s3453_s28 }
  0xaa   : > { %p3460_p11 = scmp.lt.u32.totalorder %s3453_s28, %s4415_s9 }
  0xab   : > { %p3455_p3 = pneg %p3850_p4 }
  0xad   : > { %p3456_p8 = pnand %p3455_p3, %p3454_p7 }
  0xaf   : > { %p3457_p10 = pneg %p3456_p8 }
  0xb1   : > { %p3462_p12 = pnand %p3460_p11, %p3457_p10 }
  0xb3   : > { %3465 = shalt.err (!%p3462_p12)
}
  0xb4   : > { %s3466_s18 = scalar_lea.vmem %s459_s1, 1024  ;;  %s3473_s15 = scalar_lea.vmem %s459_s1, 2048 }
  0xb5   : > { %p3467_p13 = scmp.ne.s32.totalorder %s459_s1, %s3466_s18  ;;  %p3474_p2 = scmp.lt.s32.totalorder %s459_s1, %s459_s1 }
  0xb6   : > { %p3475_p5 = scmp.lt.s32.totalorder %s3473_s15, %s3466_s18 }
  0xb7   : > { %p3469_p0 = pnand %p3467_p13, %p3455_p3 }
  0xb8   : > { %p3476_p9 = por %p3475_p5, %p3474_p2 }
  0xb9   : > { %p3470_p1 = pneg %p3469_p0 }
  0xbb   : > { %p3477_p6 = pnand %p3476_p9, %p3470_p1 }
  0xbd   : > { %3480 = shalt.err (!%p3477_p6)
}
  0xbe   : > { %3069 = dma.hbm_to_vmem [thread:$0]  (!%p3850_p4), %s4415_s9, 1024, %s459_s1, %s447_s30, %s4467_s16, %s4467_s16, %s4466_s0  }
  0xbf   : > { %p4471_p7 = scmp.ne.s32.totalorder %s4461_s27, 0 }
  0xc0   : > { %p4472_p3 = scmp.eq.s32.totalorder (!%p4471_p7), %s3692_s24, 0 }
  0xc1   : > { %480 = sbr.rel (%p4471_p7) target bundleno = 2421 (0x975), region = 64 }
  0xc8   : > { %3546 = dma.done.wait (%p4472_p3), [#allocation7], 128   ;;  %p4473_p8 = pmov %p4472_p3 }
  0xc9   : > { %p4474_p10 = pmov %p4472_p3 }
  0xca   : > { %3548 = vsyncadd (%p4473_p8), [#allocation7], 4294967168 }
  0xcb   : > { %3550 = dma.done.wait (%p4474_p10), [#allocation10], 2304   ;;  %p4475_p11 = pmov %p4472_p3 }
  0xcc   : > { %p4476_p12 = pmov %p4472_p3 }
  0xcd   : > { %3552 = vsyncadd (%p4475_p11), [#allocation10], 4294964992 }
  0xce   : > { %3554 = dma.done.wait (%p4476_p12), [#allocation13], 6144   ;;  %p4477_p4 = pmov %p4472_p3 }
  0xcf   : > { %p4478_p13 = pmov %p4472_p3 }
  0xd0   : > { %3556 = vsyncadd (%p4477_p4), [#allocation13], 4294961152 }
  0xd1   : > { %3558 = dma.done.wait (%p4478_p13), [#allocation16], 2048   ;;  %p4479_p0 = pmov %p4472_p3 }
  0xd2   : > { %s506_s27 = sand.u32 1, %s3692_s24  }
  0xd3   : > { %3560 = vsyncadd (%p4479_p0), [#allocation16], 4294965248  ;;  %s507_s0 = scalar_lea.sflag [#allocation7], %s506_s27  ;;  %p4480_p1 = pmov %p4479_p0 }
  0xd4   : > { %p4481_p2 = pmov %p4479_p0 }
  0xd5   : > { %3562 = dma.done.wait (%p4480_p1), %s507_s0, 1024  }
  0xd6   : > { %3564 = vsyncadd (%p4481_p2), %s507_s0, 4294966272  ;;  %p567_p5 = scmp.eq.s32.totalorder %s3575_s21, 0 }
  0xd7   : > { %v3144_v0 = vld [vmem:[#allocation12 + $0x4] ss:$12 sps:$4 sm:$0xff] (%p567_p5)   ;;  %vm2284_vm0 = vcmask (%p567_p5), 7168   ;;  %v3146_v1 = vld [vmem:[#allocation12] ss:$12 sps:$4 sm:$0xff] (%p567_p5)   ;;  %v3598_v2 = vmov (%p567_p5), 0.0   ;;  %v611_v59 = vlaneseq (%p567_p5) }
  0xd8   : > { %572 = sbr.rel (!%p567_p5) target bundleno = 1504 (0x5e0), region = 96  ;;  %2939 = vmatprep.subr.bf16.mxu1 (%p567_p5), %v3598_v2  ;;  %2287 = vst.msk [vmem:[#allocation5] sm:$0xff] (%p567_p5), %vm2284_vm0, %v3598_v2  ;;  %2288 = vst.msk [vmem:[#allocation5 + $0x8] sm:$0xff] (%p567_p5), %vm2284_vm0, %v3598_v2  ;;  %760 = vmatprep.subr.bf16.mxu0 (%p567_p5), %v3144_v0  ;;  %v3147_v3 = vld [vmem:[#allocation12 + $0x1c] ss:$12 sps:$4 sm:$0xff] (%p567_p5)   ;;  %v3599_v4 = vmov (%p567_p5), -inf  }
  0xd9   : > { %2285 = vst.msk [vmem:[#allocation4] sm:$0xff] (%p567_p5), %vm2284_vm0, %v3599_v4  ;;  %2286 = vst.msk [vmem:[#allocation4 + $0x8] sm:$0xff] (%p567_p5), %vm2284_vm0, %v3599_v4  ;;  %v3600_v5 = vmov (%p567_p5), 0   ;;  %761 = vmatpush1.bf16.msra.mxu0 (%p567_p5), %v3146_v1  ;;  %v3149_v6 = vld [vmem:[#allocation12 + $0x18] ss:$12 sps:$4 sm:$0xff] (%p567_p5)   ;;  %vm3601_vm1 = vmmov (%p567_p5), 0  }
  0xda   : > { %792 = vmatprep.mubr.bf16.mxu0 (%p567_p5), %v3600_v5  ;;  %2955 = vmatprep.mubr.msk.bf16.mxu1 (%p567_p5), %vm3601_vm1, %v3598_v2  ;;  %v3150_v7 = vld [vmem:[#allocation12 + $0x34] ss:$12 sps:$4 sm:$0xff] (%p567_p5)   ;;  %v3152_v8 = vld [vmem:[#allocation12 + $0x30] ss:$12 sps:$4 sm:$0xff] (%p567_p5)   ;;  %v3153_v9 = vld [vmem:[#allocation12 + $0x4c] ss:$12 sps:$4 sm:$0xff] (%p567_p5)  }
  0xdb   : > { %762 = vmatprep.subr.bf16.mxu0 (%p567_p5), %v3147_v3  ;;  %v3164_v10 = vld [vmem:[#allocation12 + $0x8] ss:$12 sps:$4 sm:$0xff] (%p567_p5)   ;;  %v3156_v12 = vld [vmem:[#allocation12 + $0x64] ss:$12 sps:$4 sm:$0xff] (%p567_p5)   ;;  %v3168_v13 = vld [vmem:[#allocation12 + $0x20] ss:$12 sps:$4 sm:$0xff] (%p567_p5)  }
  0xdc   : > { %v3155_v11 = vld [vmem:[#allocation12 + $0x48] ss:$12 sps:$4 sm:$0xff] (%p567_p5)   ;;  %2940 = vmatpush3.bf16.msra.mxu1 (%p567_p5), %v3164_v10  ;;  %v3158_v14 = vld [vmem:[#allocation12 + $0x60] ss:$12 sps:$4 sm:$0xff] (%p567_p5)   ;;  %v3170_v15 = vld [vmem:[#allocation12 + $0x38] ss:$12 sps:$4 sm:$0xff] (%p567_p5)  }
  0xdd   : > { %763 = vmatpush1.bf16.msra.mxu0 (%p567_p5), %v3149_v6  ;;  %2941 = vmatprep.subr.bf16.mxu1 (%p567_p5), %v3598_v2  ;;  %v3159_v16 = vld [vmem:[#allocation12 + $0x7c] ss:$12 sps:$4 sm:$0xff] (%p567_p5)   ;;  %v3161_v17 = vld [vmem:[#allocation12 + $0x78] ss:$12 sps:$4 sm:$0xff] (%p567_p5)   ;;  %v3162_v19 = vld [vmem:[#allocation12 + $0x94] ss:$12 sps:$4 sm:$0xff] (%p567_p5)  }
  0xde   : > { %764 = vmatprep.subr.bf16.mxu0 (%p567_p5), %v3150_v7  ;;  %v3175_v18 = vld [vmem:[#allocation12 + $0x50] ss:$12 sps:$4 sm:$0xff] (%p567_p5)   ;;  %v3179_v21 = vld [vmem:[#allocation12 + $0x68] ss:$12 sps:$4 sm:$0xff] (%p567_p5)   ;;  %v3166_v22 = vld [vmem:[#allocation12 + $0xac] ss:$12 sps:$4 sm:$0xff] (%p567_p5)  }
  0xdf   : > { %v3165_v20 = vld [vmem:[#allocation12 + $0x90] ss:$12 sps:$4 sm:$0xff]   ;;  %v3169_v23 = vld [vmem:[#allocation12 + $0xa8] ss:$12 sps:$4 sm:$0xff]   ;;  %v3183_v24 = vld [vmem:[#allocation12 + $0x80] ss:$12 sps:$4 sm:$0xff]  }
  0xe0   : > { %2942 = vmatpush3.bf16.msra.mxu1 %v3168_v13  ;;  %v3173_v25 = vld [vmem:[#allocation14 + $0x4] ss:$12 sps:$4 sm:$0xff]   ;;  %v3171_v26 = vld [vmem:[#allocation14] ss:$12 sps:$4 sm:$0xff]   ;;  %v3178_v29 = vld [vmem:[#allocation14 + $0x1c] ss:$12 sps:$4 sm:$0xff]  }
  0xe1   : > { %765 = vmatpush1.bf16.msra.mxu0 %v3152_v8  ;;  %2943 = vmatprep.subr.bf16.mxu1 %v3598_v2  ;;  %v3174_v27 = vld [vmem:[#allocation6] sm:$0xff]   ;;  %v3187_v28 = vld [vmem:[#allocation12 + $0x98] ss:$12 sps:$4 sm:$0xff]   ;;  %v3191_v31 = vld [vmem:[#allocation12 + $0xb0] ss:$12 sps:$4 sm:$0xff]   ;;  %v3928_v60 = vshrl.u32 %v611_v59, 7 }
  0xe2   : > { %766 = vmatprep.subr.bf16.mxu0 %v3153_v9  ;;  %v3176_v30 = vld [vmem:[#allocation14 + $0x18] ss:$12 sps:$4 sm:$0xff]   ;;  %v3182_v32 = vld [vmem:[#allocation14 + $0x34] ss:$12 sps:$4 sm:$0xff]   ;;  %v3180_v33 = vld [vmem:[#allocation14 + $0x30] ss:$12 sps:$4 sm:$0xff]  }
  0xe3   : > { %v3186_v34 = vld [vmem:[#allocation14 + $0x4c] ss:$12 sps:$4 sm:$0xff]   ;;  %v3198_v35 = vld [vmem:[#allocation14 + $0x8] ss:$12 sps:$4 sm:$0xff]   ;;  %v3190_v38 = vld [vmem:[#allocation14 + $0x64] ss:$12 sps:$4 sm:$0xff]  }
  0xe4   : > { %2944 = vmatpush3.bf16.msra.mxu1 %v3170_v15  ;;  %v3184_v36 = vld [vmem:[#allocation14 + $0x48] ss:$12 sps:$4 sm:$0xff]   ;;  %v3202_v37 = vld [vmem:[#allocation14 + $0x20] ss:$12 sps:$4 sm:$0xff]   ;;  %v3203_v40 = vld [vmem:[#allocation14 + $0x38] ss:$12 sps:$4 sm:$0xff]  }
  0xe5   : > { %767 = vmatpush1.bf16.msra.mxu0 %v3155_v11  ;;  %2945 = vmatprep.subr.bf16.mxu1 %v3598_v2  ;;  %v3188_v39 = vld [vmem:[#allocation14 + $0x60] ss:$12 sps:$4 sm:$0xff]   ;;  %v3194_v41 = vld [vmem:[#allocation14 + $0x7c] ss:$12 sps:$4 sm:$0xff]   ;;  %v3192_v42 = vld [vmem:[#allocation14 + $0x78] ss:$12 sps:$4 sm:$0xff]  }
  0xe6   : > { %768 = vmatprep.subr.bf16.mxu0 %v3156_v12  ;;  %v3204_v43 = vld [vmem:[#allocation14 + $0x50] ss:$12 sps:$4 sm:$0xff]   ;;  %v3197_v44 = vld [vmem:[#allocation14 + $0x94] ss:$12 sps:$4 sm:$0xff]   ;;  %v3201_v47 = vld [vmem:[#allocation14 + $0xac] ss:$12 sps:$4 sm:$0xff]  }
  0xe7   : > { %v3195_v45 = vld [vmem:[#allocation14 + $0x90] ss:$12 sps:$4 sm:$0xff]   ;;  %v3205_v46 = vld [vmem:[#allocation14 + $0x68] ss:$12 sps:$4 sm:$0xff]   ;;  %v3206_v51 = vld [vmem:[#allocation14 + $0x80] ss:$12 sps:$4 sm:$0xff]  }
  0xe8   : > { %2946 = vmatpush3.bf16.msra.mxu1 %v3175_v18  ;;  %v3199_v48 = vld [vmem:[#allocation14 + $0xa8] ss:$12 sps:$4 sm:$0xff]   ;;  %v3920_v50 = vld [vmem:[#allocation9 + $0x8] sm:$0xff]  ;;  %v3931_v61 = vsub.s32 0, %v3928_v60  ;;  %v877_v62 = vld [vmem:[%s4412_s6] sm:$0x7] }
  0xe9   : > { %769 = vmatpush1.bf16.msra.mxu0 %v3158_v14  ;;  %2947 = vmatprep.subr.bf16.mxu1 %v3598_v2  ;;  %v3918_v49 = vld [vmem:[#allocation9] sm:$0xff]  ;;  %v3207_v53 = vld [vmem:[#allocation14 + $0x98] ss:$12 sps:$4 sm:$0xff]   ;;  %v3940_v0 = vsub.s32 1, %v3928_v60  ;;  %vm1534_vm2 = vcmask 130112   ;;  %vm1671_vm3 = vcmask 1041409  }
  0xea   : > { %770 = vmatprep.subr.bf16.mxu0 %v3159_v16  ;;  %v844_v52 = vpack.c.bf16 %v3920_v50, %v3918_v49  ;;  %v3208_v54 = vld [vmem:[#allocation14 + $0xb0] ss:$12 sps:$4 sm:$0xff]   ;;  %vm1673_vm4 = vcmask 1042434   ;;  %vm1675_vm5 = vcmask 1043459   ;;  %vm1677_vm6 = vcmask 1044484  }
  0xeb   : > { %v609_v63 = vld [vmem:[%s4411_s5] sm:$0x7]  ;;  %v886_v4 = vrot.slane %v877_v62, %v3940_v0  ;;  %vm1679_vm7 = vcmask 1045509   ;;  %vm1681_vm8 = vcmask 1046534   ;;  %vm1683_vm9 = vcmask 1047559  }
  0xec   : > { %2948 = vmatpush3.bf16.msra.mxu1 %v3179_v21  ;;  %v614_v1 = vrot.slane %v609_v63, %v3931_v61  ;;  %v618_v3 = vrot.slane %v609_v63, %v3940_v0  ;;  %vm1696_vm11 = vcmask 130048  }
  0xed   : > { %771 = vmatpush1.bf16.msra.mxu0 %v3161_v17  ;;  %2949 = vmatprep.subr.bf16.mxu1 %v3598_v2 }
  0xee   : > { %772 = vmatprep.subr.bf16.mxu0 %v3162_v19  ;;  %v3001_v7 = vadd.f32 %v886_v4, %v618_v3 }
  0xf0   : > { %2950 = vmatpush3.bf16.msra.mxu1 %v3183_v24 }
  0xf1   : > { %773 = vmatpush1.bf16.msra.mxu0 %v3165_v20  ;;  %2951 = vmatprep.subr.bf16.mxu1 %v3598_v2 }
  0xf2   : > { %774 = vmatprep.subr.bf16.mxu0 %v3166_v22 }
  0xf4   : > { %2952 = vmatpush3.bf16.msra.mxu1 %v3187_v28 }
  0xf5   : > { %775 = vmatpush1.bf16.msra.mxu0 %v3169_v23  ;;  %2953 = vmatprep.subr.bf16.mxu1 %v3598_v2 }
  0xf6   : > { %1022 = vmatprep.subr.bf16.mxu0 %v3173_v25 }
  0xf8   : > { %793 = vmatmul.mubr.bf16.vlgmr.msra.gmra.mrb[0].mxu0 %v3174_v27  ;;  %2954 = vmatpush3.bf16.msra.mxu1 %v3191_v31 }
  0xf9   : > { %1023 = vmatpush1.bf16.msra.mxu0 %v3171_v26  ;;  %1054 = vmatprep.mubr.bf16.mxu0 %v3600_v5 }
  0xfa   : > { %1024 = vmatprep.subr.bf16.mxu0 %v3178_v29  ;;  %2959 = vmatprep.subr.bf16.mxu1 %v3598_v2 }
  0xfb   : > { %2956 = vmatmul.mubr.bf16.vlgmr.msra.gmra.mrb[0].mxu1 %v3174_v27  ;;  %v3947_v27 = vsub.s32 2, %v3928_v60 }
  0xfc   : > { %2960 = vmatpush3.bf16.msra.mxu1 %v3198_v35  ;;  %2975 = vmatprep.mubr.msk.bf16.mxu1 %vm3601_vm1, %v3598_v2 }
  0xfd   : > { %1025 = vmatpush1.bf16.msra.mxu0 %v3176_v30  ;;  %2961 = vmatprep.subr.bf16.mxu1 %v3598_v2  ;;  %v890_v28 = vrot.slane %v877_v62, %v3947_v27  ;;  %v622_v31 = vrot.slane %v609_v63, %v3947_v27 }
  0xfe   : > { %1026 = vmatprep.subr.bf16.mxu0 %v3182_v32 }
 0x100   : > { %2962 = vmatpush3.bf16.msra.mxu1 %v3202_v37 }
 0x101   : > { %1027 = vmatpush1.bf16.msra.mxu0 %v3180_v33  ;;  %2963 = vmatprep.subr.bf16.mxu1 %v3598_v2 }
 0x102   : > { %1028 = vmatprep.subr.bf16.mxu0 %v3186_v34 }
 0x104   : > { %2964 = vmatpush3.bf16.msra.mxu1 %v3203_v40 }
 0x105   : > { %1029 = vmatpush1.bf16.msra.mxu0 %v3184_v36  ;;  %2965 = vmatprep.subr.bf16.mxu1 %v3598_v2 }
 0x106   : > { %1030 = vmatprep.subr.bf16.mxu0 %v3190_v38 }
 0x108   : > { %2966 = vmatpush3.bf16.msra.mxu1 %v3204_v43 }
 0x109   : > { %1031 = vmatpush1.bf16.msra.mxu0 %v3188_v39  ;;  %2967 = vmatprep.subr.bf16.mxu1 %v3598_v2 }
 0x10a   : > { %1032 = vmatprep.subr.bf16.mxu0 %v3194_v41 }
 0x10c   : > { %2968 = vmatpush3.bf16.msra.mxu1 %v3205_v46 }
 0x10d   : > { %1033 = vmatpush1.bf16.msra.mxu0 %v3192_v42  ;;  %2969 = vmatprep.subr.bf16.mxu1 %v3598_v2 }
 0x10e   : > { %1034 = vmatprep.subr.bf16.mxu0 %v3197_v44  ;;  %v3602_v44 = vmov 1966171168  }
 0x110   : > { %2970 = vmatpush3.bf16.msra.mxu1 %v3206_v51 }
 0x111   : > { %1035 = vmatpush1.bf16.msra.mxu0 %v3195_v45  ;;  %2971 = vmatprep.subr.bf16.mxu1 %v3598_v2  ;;  %v1186_v45 = vunpack.c.l.s4 %v3602_v44 }
 0x112   : > { %1036 = vmatprep.subr.bf16.mxu0 %v3201_v47 }
 0x113   : > { %v1187_v47 = vunpack.c.0.s8 %v1186_v45 }
 0x114   : > { %2972 = vmatpush3.bf16.msra.mxu1 %v3207_v53 }
 0x115   : > { %1037 = vmatpush1.bf16.msra.mxu0 %v3199_v48  ;;  %2973 = vmatprep.subr.bf16.mxu1 %v3598_v2  ;;  %v882_v2 = vrot.slane %v877_v62, %v3931_v61 }
 0x117   : > { %v2999_v5 = vadd.f32 %v882_v2, %v614_v1  ;;  %v3958_v1 = vld [vmem:[#allocation11] sm:$0xff]  }
 0x118   : > { %1055 = vmatmul.mubr.bf16.vlgmr.msra.gmra.mrb[0].mxu0 %v844_v52  ;;  %2974 = vmatpush3.bf16.msra.mxu1 %v3208_v54  ;;  %v2813_v4 = vunpack.c.l.bf16 %v3958_v1 }
 0x11b   : > { %2976 = vmatmul.mubr.bf16.vlgmr.msra.gmra.mrb[4].mxu1 %v844_v52 }
 0x1ce   : > { %v837_v55 = vpop.f32.mrb[0].mxu1 }
 0x1cf   : > { %v2957_v56 = vpop.f32.mrb[1].mxu1  ;;  %v838_v36 = vadd.f32 %v837_v55, %v622_v31 }
 0x1d0   : > { %v840_v57 = vpop.f32.mrb[2].mxu1  ;;  %v3953_v56 = vsub.s32 %v1187_v47, %v3928_v60 }
 0x1d1   : > { %v2958_v58 = vpop.f32.mrb[3].mxu1  ;;  %v841_v40 = vadd.f32 %v840_v57, %v622_v31 }
 0x1eb   : > { %v1056_v6 = vpop.f32.mrb[0].mxu0 }
 0x1ec   : > { %v3000_v8 = vadd.f32 %v2999_v5, %v1056_v6  ;;  %v1058_v9 = vpop.f32.mrb[1].mxu0 }
 0x1ed   : > { %v1060_v10 = vpop.f32.mrb[2].mxu0  ;;  %v3002_v14 = vadd.f32 %v3001_v7, %v1058_v9 }
 0x1ee   : > { %v2770_v11 = vmul.f32 -1.442695, %v3000_v8  ;;  %v3004_v12 = vadd.f32 %v2999_v5, %v1060_v10  ;;  %v1062_v13 = vpop.f32.mrb[3].mxu0  ;;  %v1099_v18 = vpop.f32.mrb[4].mxu1 }
 0x1ef   : > { %v3006_v16 = vadd.f32 %v3001_v7, %v1062_v13  ;;  %v2772_v17 = vmul.f32 -1.442695, %v3002_v14  ;;  %v2977_v19 = vpop.f32.mrb[5].mxu1  ;;  %v1100_v33 = vadd.f32 %v1099_v18, %v890_v28  ;;  %v3984_v14 = vld [vmem:[#allocation11 + $0x40] sm:$0xff]  }
 0x1f0   : > { %3225 = vpow2.f32 %v2770_v11  ;;  %v2771_v15 = vmul.f32 -1.442695, %v3004_v12  ;;  %v1102_v21 = vpop.f32.mrb[6].mxu1  ;;  %v2814_v11 = vunpack.c.h.bf16 %v3958_v1  ;;  %v4445_v19 = vunpack.c.l.bf16 %v3984_v14 }
 0x1f1   : > { %v2773_v20 = vmul.f32 -1.442695, %v3006_v16  ;;  %v2978_v22 = vpop.f32.mrb[7].mxu1  ;;  %v1103_v38 = vadd.f32 %v1102_v21, %v890_v28 }
 0x1f2   : > { %3227 = vpow2.f32 %v2771_v15  ;;  %v3996_v22 = vld [vmem:[#allocation11 + $0x10] sm:$0xff]  }
 0x1f3   : > { %3229 = vpow2.f32 %v2772_v17  ;;  %v4454_v28 = vunpack.c.l.bf16 %v3996_v22 }
 0x1f4   : > { %3231 = vpow2.f32 %v2773_v20 }
 0x1fa   : > { %v3226_v23 = vpop.eup %3225 }
 0x1fb   : > { %v1114_v24 = vadd.f32 1.0, %v3226_v23 }
 0x1fc   : > { %v3228_v25 = vpop.eup %3227 }
 0x1fd   : > { %3233 = vrcp.f32 %v1114_v24  ;;  %v1115_v26 = vadd.f32 1.0, %v3228_v25  ;;  %v3230_v29 = vpop.eup %3229 }
 0x1fe   : > { %v3232_v30 = vpop.eup %3231  ;;  %v1128_v32 = vadd.f32 1.0, %v3230_v29 }
 0x1ff   : > { %3235 = vrcp.f32 %v1115_v26  ;;  %v1129_v34 = vadd.f32 1.0, %v3232_v30  ;;  %v4451_v26 = vunpack.c.h.bf16 %v3984_v14 }
 0x200   : > { %3237 = vrcp.f32 %v1128_v32 }
 0x201   : > { %3239 = vrcp.f32 %v1129_v34 }
 0x207   : > { %v3234_v35 = vpop.eup %3233 }
 0x208   : > { %v1134_v37 = vmul.f32 %v3234_v35, %v1100_v33  ;;  %v4009_v33 = vld [vmem:[#allocation11 + $0x20] sm:$0xff]   ;;  %v2822_v35 = vunpack.c.h.bf16 %v3996_v22 }
 0x209   : > { %v3236_v39 = vpop.eup %3235 }
 0x20a   : > { %v1136_v41 = vadd.f32 %v1134_v37, %v838_v36  ;;  %v1135_v42 = vmul.f32 %v3236_v39, %v1103_v38  ;;  %v3238_v46 = vpop.eup %3237  ;;  %v4448_v37 = vunpack.c.l.bf16 %v4009_v33  ;;  %v4019_v39 = vld [vmem:[#allocation11 + $0x48] sm:$0xff]  }
 0x20b   : > { %v3240_v48 = vpop.eup %3239  ;;  %v1140_v51 = vsub.f32 1.0, %v3238_v46  ;;  %v1144_v53 = vmul.f32 %v3238_v46, %v3918_v49  ;;  %v3965_v49 = vld [vmem:[#allocation11 + $0x8] sm:$0xff]   ;;  %v4032_v46 = vld [vmem:[#allocation11 + $0x50] sm:$0xff]  }
 0x20c   : > { %3241 = vtanh.f32 %v1136_v41  ;;  %v1137_v43 = vadd.f32 %v1135_v42, %v841_v40  ;;  %v1141_v54 = vsub.f32 1.0, %v3240_v48  ;;  %v1145_v58 = vmul.f32 %v3240_v48, %v3920_v50 }
 0x20d   : > { %v2817_v9 = vunpack.c.l.bf16 %v3965_v49  ;;  %v2818_v18 = vunpack.c.h.bf16 %v3965_v49  ;;  %v4447_v42 = vunpack.c.h.bf16 %v4009_v33 }
 0x20e   : > { %3243 = vtanh.f32 %v1137_v43  ;;  %v4450_v43 = vunpack.c.l.bf16 %v4019_v39 }
 0x216   : > { %v3242_v52 = vpop.eup %3241 }
 0x217   : > { %v1142_v55 = vmul.f32 %v3242_v52, %v1140_v51  ;;  %v4449_v52 = vunpack.c.h.bf16 %v4019_v39 }
 0x218   : > { %v3244_v57 = vpop.eup %3243 }
 0x219   : > { %v1143_v62 = vmul.f32 %v3244_v57, %v1141_v54  ;;  %v3956_v63 = vadd.f32 %v1144_v53, %v1142_v55  ;;  %v4440_v53 = vunpack.c.l.bf16 %v4032_v46  ;;  %v4043_v57 = vld [vmem:[#allocation11 + $0x18] sm:$0xff]  }
 0x21b   : > { %v1191_v2 = vrot.slane %v3956_v63, %v3953_v56  ;;  %1148 = vst [vmem:[#allocation18] sm:$0xff] %v3956_v63  ;;  %v3963_v3 = vadd.f32 %v1145_v58, %v1143_v62  ;;  %v1184_v16 = vcombine.high %v3956_v63, %v3956_v63 }
 0x21d   : > { %v1207_v5 = vrot.slane %v1191_v2, %v3953_v56  ;;  %v1199_v6 = vcombine.high %v1191_v2, %v1191_v2  ;;  %v1240_v50 = vrot.slane %v3963_v3, %v3953_v56  ;;  %1149 = vst [vmem:[#allocation18 + $0x8] sm:$0xff] %v3963_v3  ;;  %v1198_v24 = vrot.slane %v1184_v16, %v3953_v56 }
 0x21e   : > { %v1233_v48 = vcombine.high %v3963_v3, %v3963_v3  ;;  %v4453_v16 = vunpack.c.h.bf16 %v4043_v57 }
 0x21f   : > { %v1317_v8 = vrot.slane %v1207_v5, %v3931_v61  ;;  %v3977_v10 = vrot.slane %v1199_v6, %v3953_v56  ;;  %v1256_v15 = vrot.slane %v1240_v50, %v3953_v56  ;;  %v1229_v23 = vcombine.high %v1207_v5, %v1207_v5 }
 0x220   : > { %v4007_v31 = vrot.slane %v1198_v24, %v3953_v56  ;;  %v1248_v32 = vcombine.high %v1240_v50, %v1240_v50  ;;  %v1247_v62 = vrot.slane %v1233_v48, %v3953_v56  ;;  %v4439_v5 = vunpack.c.h.bf16 %v4032_v46 }
 0x221   : > { %v1394_v12 = vmul.f32 %v2813_v4, %v1317_v8  ;;  %v1321_v13 = vrot.slane %v3977_v10, %v3931_v61  ;;  %v1395_v20 = vmul.f32 %v2814_v11, %v1317_v8  ;;  %v1349_v21 = vrot.slane %v1256_v15, %v3931_v61 }
 0x222   : > { %v1325_v30 = vrot.slane %v1229_v23, %v3931_v61  ;;  %v1333_v38 = vrot.slane %v4007_v31, %v3931_v61  ;;  %v4022_v40 = vrot.slane %v1248_v32, %v3953_v56  ;;  %v1278_v47 = vcombine.high %v1256_v15, %v1256_v15 }
 0x223   : > { %1426 = vadd.xlane.f32.xlu0 %v1394_v12  ;;  %v1396_v17 = vmul.f32 %v2817_v9, %v1321_v13  ;;  %v1397_v25 = vmul.f32 %v2818_v18, %v1321_v13  ;;  %v1410_v29 = vmul.f32 %v4445_v19, %v1349_v21  ;;  %v1411_v34 = vmul.f32 %v4451_v26, %v1349_v21 }
 0x224   : > { %v1398_v36 = vmul.f32 %v4454_v28, %v1325_v30  ;;  %v1399_v41 = vmul.f32 %v2822_v35, %v1325_v30  ;;  %v1402_v44 = vmul.f32 %v4448_v37, %v1333_v38  ;;  %v1353_v45 = vrot.slane %v4022_v40, %v3931_v61 }
 0x225   : > { %1430 = vadd.xlane.f32.xlu1 %v1396_v17  ;;  %v1403_v51 = vmul.f32 %v4447_v42, %v1333_v38  ;;  %v1357_v55 = vrot.slane %v1278_v47, %v3931_v61  ;;  %v1231_v58 = vcombine.high %v3977_v10, %v3977_v10  ;;  %v4452_v6 = vunpack.c.l.bf16 %v4043_v57  ;;  %v4056_v10 = vld [vmem:[#allocation11 + $0x60] sm:$0xff]  }
 0x226   : > { %v1412_v54 = vmul.f32 %v4450_v43, %v1353_v45  ;;  %v1413_v2 = vmul.f32 %v4449_v52, %v1353_v45  ;;  %v1263_v12 = vrot.slane %v1247_v62, %v3953_v56  ;;  %v1200_v13 = vcombine.high %v1198_v24, %v1198_v24 }
 0x227   : > { %1428 = vadd.xlane.f32.xlu0 %v1395_v20  ;;  %v1414_v50 = vmul.f32 %v4440_v53, %v1357_v55  ;;  %v1329_v8 = vrot.slane %v1231_v58, %v3931_v61  ;;  %v1415_v15 = vmul.f32 %v4439_v5, %v1357_v55  ;;  %v4434_v20 = vunpack.c.l.bf16 %v4056_v10  ;;  %v4088_v55 = vld [vmem:[#allocation11 + $0x58] sm:$0xff]  }
 0x228   : > { %v1365_v21 = vrot.slane %v1263_v12, %v3931_v61  ;;  %v1228_v23 = vrot.slane %v1200_v13, %v3953_v56  ;;  %v1230_v38 = vcombine.high %v4007_v31, %v4007_v31 }
 0x229   : > { %1432 = vadd.xlane.f32.xlu1 %v1397_v25  ;;  %v1400_v17 = vmul.f32 %v4452_v6, %v1329_v8  ;;  %v4066_v25 = vld [vmem:[#allocation11 + $0x28] sm:$0xff]   ;;  %v1401_v24 = vmul.f32 %v4453_v16, %v1329_v8 }
 0x22a   : > { %v1418_v30 = vmul.f32 %v4434_v20, %v1365_v21  ;;  %v4443_v32 = vunpack.c.l.bf16 %v4066_v25  ;;  %v1341_v48 = vrot.slane %v1230_v38, %v3931_v61 }
 0x22b   : > { %1458 = vadd.xlane.f32.xlu0 %v1410_v29  ;;  %v4433_v29 = vunpack.c.h.bf16 %v4056_v10 }
 0x22d   : > { %1460 = vadd.xlane.f32.xlu1 %v1411_v34  ;;  %v1337_v34 = vrot.slane %v1228_v23, %v3931_v61 }
 0x22f   : > { %1434 = vadd.xlane.f32.xlu0 %v1398_v36  ;;  %v4075_v36 = vld [vmem:[#allocation11 + $0x30] sm:$0xff]   ;;  %v1404_v47 = vmul.f32 %v4443_v32, %v1337_v34 }
 0x230   : > { %v4441_v45 = vunpack.c.l.bf16 %v4075_v36  ;;  %v4444_v58 = vunpack.c.h.bf16 %v4075_v36 }
 0x231   : > { %1436 = vadd.xlane.f32.xlu1 %v1399_v41  ;;  %v1419_v41 = vmul.f32 %v4433_v29, %v1365_v21 }
 0x233   : > { %1442 = vadd.xlane.f32.xlu0 %v1402_v44  ;;  %v4446_v44 = vunpack.c.h.bf16 %v4066_v25 }
 0x235   : > { %1444 = vadd.xlane.f32.xlu1 %v1403_v51  ;;  %v1280_v51 = vcombine.high %v4022_v40, %v4022_v40  ;;  %v1405_v31 = vmul.f32 %v4446_v44, %v1337_v34  ;;  %v4098_v40 = vld [vmem:[#allocation11 + $0x68] sm:$0xff]   ;;  %v4107_v34 = vld [vmem:[#allocation11 + $0x70] sm:$0xff]  }
 0x236   : > { %v4431_v21 = vunpack.c.l.bf16 %v4098_v40  ;;  %v4430_v38 = vunpack.c.h.bf16 %v4098_v40 }
 0x237   : > { %1462 = vadd.xlane.f32.xlu0 %v1412_v54  ;;  %v1249_v54 = vcombine.high %v1247_v62, %v1247_v62  ;;  %v1361_v8 = vrot.slane %v1280_v51, %v3931_v61  ;;  %v1407_v62 = vmul.f32 %v4444_v58, %v1341_v48  ;;  %v1232_v51 = vcombine.high %v1228_v23, %v1228_v23 }
 0x239   : > { %1464 = vadd.xlane.f32.xlu1 %v1413_v2  ;;  %v1406_v2 = vmul.f32 %v4441_v45, %v1341_v48  ;;  %v1277_v13 = vrot.slane %v1249_v54, %v3953_v56  ;;  %v4116_v54 = vld [vmem:[#allocation11 + $0x38] sm:$0xff]  }
 0x23b   : > { %1466 = vadd.xlane.f32.xlu0 %v1414_v50  ;;  %v4437_v50 = vunpack.c.l.bf16 %v4088_v55 }
 0x23d   : > { %1468 = vadd.xlane.f32.xlu1 %v1415_v15  ;;  %v4436_v15 = vunpack.c.h.bf16 %v4088_v55 }
 0x23f   : > { %1438 = vadd.xlane.f32.xlu0 %v1400_v17  ;;  %v1416_v17 = vmul.f32 %v4437_v50, %v1361_v8  ;;  %v1417_v56 = vmul.f32 %v4436_v15, %v1361_v8  ;;  %v4438_v8 = vunpack.c.l.bf16 %v4116_v54  ;;  %v4154_v50 = vand.u32 127, %v611_v59 }
 0x241   : > { %1440 = vadd.xlane.f32.xlu1 %v1401_v24  ;;  %v1369_v24 = vrot.slane %v1277_v13, %v3931_v61  ;;  %v1529_v5 = vadd.s32 4294967288, %v4154_v50  ;;  %v4162_v58 = vsub.s32 %v4154_v50, %v3928_v60  ;;  %vm1492_vm10 = vcmp.lt.s32.totalorder %v4154_v50, 8 }
 0x243   : > { %1474 = vadd.xlane.f32.xlu0 %v1418_v30  ;;  %v1279_v30 = vcombine.high %v1263_v12, %v1263_v12  ;;  %v1421_v12 = vmul.f32 %v4430_v38, %v1369_v24 }
 0x245   : > { %1476 = vadd.xlane.f32.xlu1 %v1419_v41  ;;  %v1420_v41 = vmul.f32 %v4431_v21, %v1369_v24  ;;  %v1373_v48 = vrot.slane %v1279_v30, %v3931_v61  ;;  %v4442_v30 = vunpack.c.h.bf16 %v4116_v54 }
 0x247   : > { %1446 = vadd.xlane.f32.xlu0 %v1404_v47  ;;  %v4429_v47 = vunpack.c.l.bf16 %v4107_v34 }
 0x249   : > { %1448 = vadd.xlane.f32.xlu1 %v1405_v31  ;;  %v4428_v31 = vunpack.c.h.bf16 %v4107_v34 }
 0x24b   : > { %1450 = vadd.xlane.f32.xlu0 %v1406_v2  ;;  %v1422_v2 = vmul.f32 %v4429_v47, %v1373_v48  ;;  %v1423_v23 = vmul.f32 %v4428_v31, %v1373_v48 }
 0x24d   : > { %1452 = vadd.xlane.f32.xlu1 %v1407_v62  ;;  %v1345_v62 = vrot.slane %v1232_v51, %v3931_v61 }
 0x24f   : > { %1470 = vadd.xlane.f32.xlu0 %v1416_v17  ;;  %v1281_v17 = vcombine.high %v1277_v13, %v1277_v13  ;;  %v1408_v24 = vmul.f32 %v4438_v8, %v1345_v62  ;;  %v1409_v13 = vmul.f32 %v4442_v30, %v1345_v62  ;;  %v4158_v30 = vsub.s32 %v1529_v5, %v3928_v60 }
 0x251   : > { %1472 = vadd.xlane.f32.xlu1 %v1417_v56  ;;  %v4125_v56 = vld [vmem:[#allocation11 + $0x78] sm:$0xff]  }
 0x252   : > { %v4435_v51 = vunpack.c.h.bf16 %v4125_v56 }
 0x253   : > { %1478 = vadd.xlane.f32.xlu0 %v1420_v41  ;;  %v4432_v41 = vunpack.c.l.bf16 %v4125_v56 }
 0x255   : > { %1480 = vadd.xlane.f32.xlu1 %v1421_v12  ;;  %v1377_v12 = vrot.slane %v1281_v17, %v3931_v61 }
 0x257   : > { %1482 = vadd.xlane.f32.xlu0 %v1422_v2  ;;  %v1424_v48 = vmul.f32 %v4432_v41, %v1377_v12  ;;  %v1425_v2 = vmul.f32 %v4435_v51, %v1377_v12 }
 0x259   : > { %1484 = vadd.xlane.f32.xlu1 %v1423_v23 }
 0x25b   : > { %1454 = vadd.xlane.f32.xlu0 %v1408_v24 }
 0x25d   : > { %1456 = vadd.xlane.f32.xlu1 %v1409_v13 }
 0x25f   : > { %1486 = vadd.xlane.f32.xlu0 %v1424_v48 }
 0x261   : > { %1488 = vadd.xlane.f32.xlu1 %v1425_v2 }
 0x2b0   : > { %v1427_v23 = vpop.xlane.xlu0 %1426 }
 0x2b1   : > { %v1528_v37 = vrot.slane %v1427_v23, %v4162_v58 }
 0x2b2   : > { %v1431_v7 = vpop.xlane.xlu1 %1430 }
 0x2b3   : > { %v1539_v43 = vrot.slane %v1431_v7, %v4162_v58 }
 0x2b4   : > { %v1429_v31 = vpop.xlane.xlu0 %1428 }
 0x2b5   : > { %v1533_v44 = vrot.slane %v1429_v31, %v4158_v30 }
 0x2b6   : > { %v1433_v47 = vpop.xlane.xlu1 %1432 }
 0x2b7   : > { %v1543_v59 = vrot.slane %v1433_v47, %v4158_v30  ;;  %v1535_v31 = vsel %vm1534_vm2, %v1533_v44, %v1528_v37 }
 0x2b8   : > { %v4141_v17 = vpop.xlane.xlu0 %1458 }
 0x2b9   : > { %v1544_v23 = vsel %vm1534_vm2, %v1543_v59, %v1539_v43 }
 0x2ba   : > { %v4143_v24 = vpop.xlane.xlu1 %1460 }
 0x2bc   : > { %v1435_v62 = vpop.xlane.xlu0 %1434 }
 0x2bd   : > { %v1548_v6 = vrot.slane %v1435_v62, %v4162_v58 }
 0x2be   : > { %v1437_v38 = vpop.xlane.xlu1 %1436 }
 0x2bf   : > { %v1552_v52 = vrot.slane %v1437_v38, %v4158_v30  ;;  %v1602_v38 = vrot.slane %v4141_v17, %v4162_v58 }
 0x2c0   : > { %v4145_v21 = vpop.xlane.xlu0 %1442 }
 0x2c1   : > { %v1553_v37 = vsel %vm1534_vm2, %v1552_v52, %v1548_v6  ;;  %v1566_v52 = vrot.slane %v4145_v21, %v4162_v58 }
 0x2c2   : > { %v4147_v13 = vpop.xlane.xlu1 %1444 }
 0x2c3   : > { %v1570_v44 = vrot.slane %v4147_v13, %v4158_v30 }
 0x2c4   : > { %v1463_v41 = vpop.xlane.xlu0 %1462 }
 0x2c5   : > { %v1611_v62 = vrot.slane %v1463_v41, %v4162_v58 }
 0x2c6   : > { %v1465_v48 = vpop.xlane.xlu1 %1464 }
 0x2c7   : > { %v1615_v16 = vrot.slane %v1465_v48, %v4158_v30 }
 0x2c8   : > { %v1467_v29 = vpop.xlane.xlu0 %1466 }
 0x2c9   : > { %v1620_v43 = vrot.slane %v1467_v29, %v4162_v58  ;;  %v1616_v6 = vsel %vm1534_vm2, %v1615_v16, %v1611_v62 }
 0x2ca   : > { %v1469_v20 = vpop.xlane.xlu1 %1468 }
 0x2cb   : > { %v1624_v28 = vrot.slane %v1469_v20, %v4158_v30 }
 0x2cc   : > { %v1439_v12 = vpop.xlane.xlu0 %1438 }
 0x2cd   : > { %v1557_v7 = vrot.slane %v1439_v12, %v4162_v58  ;;  %v1625_v29 = vsel %vm1534_vm2, %v1624_v28, %v1620_v43 }
 0x2ce   : > { %v1441_v2 = vpop.xlane.xlu1 %1440 }
 0x2cf   : > { %v1561_v26 = vrot.slane %v1441_v2, %v4158_v30  ;;  %v1606_v2 = vrot.slane %v4143_v24, %v4158_v30  ;;  %v1672_v24 = vsel %vm1671_vm3, %v1544_v23, %v1535_v31  ;;  %v1571_v31 = vsel %vm1534_vm2, %v1570_v44, %v1566_v52 }
 0x2d0   : > { %v4149_v51 = vpop.xlane.xlu0 %1474  ;;  %v1674_v59 = vsel %vm1673_vm4, %v1553_v37, %v1672_v24 }
 0x2d1   : > { %v1562_v20 = vsel %vm1534_vm2, %v1561_v26, %v1557_v7 }
 0x2d2   : > { %v4151_v15 = vpop.xlane.xlu1 %1476  ;;  %v1676_v23 = vsel %vm1675_vm5, %v1562_v20, %v1674_v59 }
 0x2d3   : > { %v1678_v20 = vsel %vm1677_vm6, %v1571_v31, %v1676_v23 }
 0x2d4   : > { %v1447_v8 = vpop.xlane.xlu0 %1446 }
 0x2d5   : > { %v1575_v26 = vrot.slane %v1447_v8, %v4162_v58 }
 0x2d6   : > { %v1449_v53 = vpop.xlane.xlu1 %1448 }
 0x2d7   : > { %v1579_v17 = vrot.slane %v1449_v53, %v4158_v30 }
 0x2d8   : > { %v1451_v45 = vpop.xlane.xlu0 %1450 }
 0x2d9   : > { %v1584_v21 = vrot.slane %v1451_v45, %v4162_v58  ;;  %v1580_v7 = vsel %vm1534_vm2, %v1579_v17, %v1575_v26 }
 0x2da   : > { %v1453_v32 = vpop.xlane.xlu1 %1452  ;;  %v1680_v24 = vsel %vm1679_vm7, %v1580_v7, %v1678_v20 }
 0x2db   : > { %v1588_v41 = vrot.slane %v1453_v32, %v4158_v30 }
 0x2dc   : > { %v1471_v19 = vpop.xlane.xlu0 %1470 }
 0x2dd   : > { %v1629_v53 = vrot.slane %v1471_v19, %v4162_v58  ;;  %v1642_v19 = vrot.slane %v4151_v15, %v4158_v30 }
 0x2de   : > { %v1473_v42 = vpop.xlane.xlu1 %1472 }
 0x2df   : > { %v1633_v12 = vrot.slane %v1473_v42, %v4158_v30  ;;  %v1607_v42 = vsel %vm1534_vm2, %v1606_v2, %v1602_v38  ;;  %v1589_v38 = vsel %vm1534_vm2, %v1588_v41, %v1584_v21 }
 0x2e0   : > { %v1479_v5 = vpop.xlane.xlu0 %1478  ;;  %v1685_v32 = vsel %vm1671_vm3, %v1616_v6, %v1607_v42  ;;  %v1682_v6 = vsel %vm1681_vm8, %v1589_v38, %v1680_v24 }
 0x2e1   : > { %v1634_v37 = vsel %vm1534_vm2, %v1633_v12, %v1629_v53  ;;  %v1686_v8 = vsel %vm1673_vm4, %v1625_v29, %v1685_v32  ;;  %v1647_v45 = vrot.slane %v1479_v5, %v4162_v58 }
 0x2e2   : > { %v1481_v47 = vpop.xlane.xlu1 %1480  ;;  %v1687_v17 = vsel %vm1675_vm5, %v1634_v37, %v1686_v8 }
 0x2e3   : > { %v1651_v28 = vrot.slane %v1481_v47, %v4158_v30  ;;  %v1638_v47 = vrot.slane %v4149_v51, %v4162_v58 }
 0x2e4   : > { %v1483_v48 = vpop.xlane.xlu0 %1482 }
 0x2e5   : > { %v1656_v15 = vrot.slane %v1483_v48, %v4162_v58  ;;  %v1652_v52 = vsel %vm1534_vm2, %v1651_v28, %v1647_v45  ;;  %v1643_v41 = vsel %vm1534_vm2, %v1642_v19, %v1638_v47 }
 0x2e6   : > { %v1485_v13 = vpop.xlane.xlu1 %1484  ;;  %v1688_v53 = vsel %vm1677_vm6, %v1643_v41, %v1687_v17 }
 0x2e7   : > { %v1660_v2 = vrot.slane %v1485_v13, %v4158_v30  ;;  %v1689_v31 = vsel %vm1679_vm7, %v1652_v52, %v1688_v53  ;;  %v1765_v52 = vsub.s32 4, %v3928_v60 }
 0x2e8   : > { %v1455_v16 = vpop.xlane.xlu0 %1454 }
 0x2e9   : > { %v1593_v62 = vrot.slane %v1455_v16, %v4162_v58  ;;  %v1661_v13 = vsel %vm1534_vm2, %v1660_v2, %v1656_v15  ;;  %v1754_v15 = vsub.s32 3, %v3928_v60 }
 0x2ea   : > { %v1457_v44 = vpop.xlane.xlu1 %1456  ;;  %v1690_v21 = vsel %vm1681_vm8, %v1661_v13, %v1689_v31  ;;  %v1787_v13 = vsub.s32 6, %v3928_v60 }
 0x2eb   : > { %v1597_v43 = vrot.slane %v1457_v44, %v4158_v30 }
 0x2ec   : > { %v1487_v12 = vpop.xlane.xlu0 %1486 }
 0x2ed   : > { %v1598_v5 = vsel %vm1534_vm2, %v1597_v43, %v1593_v62  ;;  %v1665_v29 = vrot.slane %v1487_v12, %v4162_v58 }
 0x2ee   : > { %v1489_v59 = vpop.xlane.xlu1 %1488  ;;  %v1684_v51 = vsel %vm1683_vm9, %v1598_v5, %v1682_v6  ;;  %v1776_v6 = vsub.s32 5, %v3928_v60 }
 0x2ef   : > { %v1669_v48 = vrot.slane %v1489_v59, %v4158_v30  ;;  %v1694_v26 = vsel %vm1492_vm10, %v1684_v51, -1e+30  ;;  %v1798_v51 = vsub.s32 7, %v3928_v60 }
 0x2f0   : > { %v1697_v42 = vsel %vm1696_vm11, %v1694_v26, -inf }
 0x2f1   : > { %1698 = vmax.xlane.f32.xlu0 %v1697_v42  ;;  %v1670_v23 = vsel %vm1534_vm2, %v1669_v48, %v1665_v29 }
 0x2f2   : > { %v1691_v16 = vsel %vm1683_vm9, %v1670_v23, %v1690_v21 }
 0x2f3   : > { %v1695_v58 = vsel %vm1492_vm10, %v1691_v16, -1e+30 }
 0x2f4   : > { %v1700_v30 = vsel %vm1696_vm11, %v1695_v58, -inf }
 0x2f5   : > { %1701 = vmax.xlane.f32.xlu1 %v1700_v30  ;;  %v3212_v30 = vld [vmem:[#allocation15 + $0x8] sm:$0xff]  }
 0x37e   : > { %v1699_v32 = vpop.xlane.xlu0 %1698 }
 0x37f   : > { %v1703_v7 = vsub.f32 %v1694_v26, %v1699_v32  ;;  %v3213_v32 = vld [vmem:[#allocation15 + $0x50] sm:$0xff]  }
 0x381   : > { %v1705_v37 = vmul.f32 1.442695, %v1703_v7  ;;  %v3214_v7 = vld [vmem:[#allocation15 + $0x10] sm:$0xff]  }
 0x382   : > { %v1702_v28 = vpop.xlane.xlu1 %1701 }
 0x383   : > { %3245 = vpow2.f32 %v1705_v37  ;;  %v1704_v8 = vsub.f32 %v1695_v58, %v1702_v28  ;;  %v3210_v58 = vld [vmem:[#allocation15] sm:$0xff]   ;;  %v3215_v37 = vld [vmem:[#allocation15 + $0x58] sm:$0xff]  }
 0x384   : > { %v3216_v28 = vld [vmem:[#allocation15 + $0x18] sm:$0xff]  }
 0x385   : > { %v1707_v19 = vmul.f32 1.442695, %v1704_v8  ;;  %v3217_v8 = vld [vmem:[#allocation15 + $0x60] sm:$0xff]  }
 0x387   : > { %3247 = vpow2.f32 %v1707_v19  ;;  %v3218_v19 = vld [vmem:[#allocation15 + $0x20] sm:$0xff]  }
 0x38d   : > { %v3246_v38 = vpop.eup %3245 }
 0x38e   : > { %v1709_v2 = vsel %vm1696_vm11, %v3246_v38, 0.0 }
 0x38f   : > { %1710 = vadd.xlane.f32.xlu0 %v1709_v2  ;;  %v3220_v2 = vld [vmem:[#allocation15 + $0x28] sm:$0xff]  }
 0x391   : > { %v3248_v44 = vpop.eup %3247 }
 0x392   : > { %v1712_v45 = vsel %vm1696_vm11, %v3248_v44, 0.0 }
 0x393   : > { %1713 = vadd.xlane.f32.xlu1 %v1712_v45  ;;  %v3222_v45 = vld [vmem:[#allocation15 + $0x30] sm:$0xff]  }
 0x41c   : > { %v1711_v50 = vpop.xlane.xlu0 %1710 }
 0x41d   : > { %3249 = vrcp.f32 %v1711_v50  ;;  %v3223_v50 = vld [vmem:[#allocation15 + $0x78] sm:$0xff]  }
 0x420   : > { %v1714_v12 = vpop.xlane.xlu1 %1713 }
 0x421   : > { %3251 = vrcp.f32 %v1714_v12 }
 0x427   : > { %v3250_v62 = vpop.eup %3249 }
 0x428   : > { %v1717_v43 = vmul.f32 %v3250_v62, %v3246_v38  ;;  %v3219_v38 = vld [vmem:[#allocation15 + $0x68] sm:$0xff]   ;;  %v3224_v62 = vld [vmem:[#allocation15 + $0x38] sm:$0xff]  }
 0x42a   : > { %v1722_v20 = vrot.slane %v1717_v43, %v3931_v61  ;;  %v1733_v47 = vrot.slane %v1717_v43, %v3940_v0  ;;  %v1744_v17 = vrot.slane %v1717_v43, %v3947_v27  ;;  %v1755_v24 = vrot.slane %v1717_v43, %v1754_v15 }
 0x42b   : > { %v1766_v5 = vrot.slane %v1717_v43, %v1765_v52  ;;  %v1777_v41 = vrot.slane %v1717_v43, %v1776_v6  ;;  %v1788_v59 = vrot.slane %v1717_v43, %v1787_v13  ;;  %v3252_v29 = vpop.eup %3251  ;;  %v1799_v26 = vrot.slane %v1717_v43, %v1798_v51 }
 0x42c   : > { %1728 = vbcast.lane.b32.xlu1 %v1722_v20, 264  ;;  %1724 = vbcast.lane.b32.xlu0 %v1722_v20, 256  ;;  %v1718_v48 = vmul.f32 %v3252_v29, %v3248_v44  ;;  %v3221_v44 = vld [vmem:[#allocation15 + $0x70] sm:$0xff]  }
 0x42e   : > { %v1810_v53 = vrot.slane %v1718_v48, %v3931_v61  ;;  %v1821_v42 = vrot.slane %v1718_v48, %v3940_v0  ;;  %v1832_v31 = vrot.slane %v1718_v48, %v3947_v27  ;;  %v1843_v60 = vrot.slane %v1718_v48, %v1754_v15  ;;  %v3209_v61 = vld [vmem:[#allocation15 + $0x40] sm:$0xff]   ;;  %v3211_v0 = vld [vmem:[#allocation15 + $0x48] sm:$0xff]  }
 0x42f   : > { %v1854_v23 = vrot.slane %v1718_v48, %v1765_v52  ;;  %v1865_v21 = vrot.slane %v1718_v48, %v1776_v6  ;;  %v1876_v16 = vrot.slane %v1718_v48, %v1787_v13  ;;  %2908 = vmatprep.subr.bf16.mxu0 %v3209_v61  ;;  %v1887_v27 = vrot.slane %v1718_v48, %v1798_v51 }
 0x430   : > { %1735 = vbcast.lane.b32.xlu1 %v1733_v47, 256  ;;  %1746 = vbcast.lane.b32.xlu0 %v1744_v17, 256 }
 0x431   : > { %2909 = vmatpush3.bf16.msra.mxu0 %v3210_v58 }
 0x432   : > { %2910 = vmatprep.subr.bf16.mxu0 %v3211_v0  ;;  %v4482_v0 = vunpack.c.l.bf16 %v3996_v22 }
 0x434   : > { %1739 = vbcast.lane.b32.xlu1 %v1733_v47, 264  ;;  %1757 = vbcast.lane.b32.xlu0 %v1755_v24, 256 }
 0x435   : > { %2911 = vmatpush3.bf16.msra.mxu0 %v3212_v30 }
 0x436   : > { %2912 = vmatprep.subr.bf16.mxu0 %v3213_v32 }
 0x438   : > { %1750 = vbcast.lane.b32.xlu1 %v1744_v17, 264  ;;  %1768 = vbcast.lane.b32.xlu0 %v1766_v5, 256 }
 0x439   : > { %2913 = vmatpush3.bf16.msra.mxu0 %v3214_v7 }
 0x43a   : > { %2914 = vmatprep.subr.bf16.mxu0 %v3215_v37  ;;  %v4483_v37 = vunpack.c.h.bf16 %v4043_v57 }
 0x43c   : > { %1761 = vbcast.lane.b32.xlu1 %v1755_v24, 264  ;;  %1779 = vbcast.lane.b32.xlu0 %v1777_v41, 256 }
 0x43d   : > { %2915 = vmatpush3.bf16.msra.mxu0 %v3216_v28 }
 0x43e   : > { %2916 = vmatprep.subr.bf16.mxu0 %v3217_v8 }
 0x440   : > { %1772 = vbcast.lane.b32.xlu1 %v1766_v5, 264  ;;  %1790 = vbcast.lane.b32.xlu0 %v1788_v59, 256 }
 0x441   : > { %2917 = vmatpush3.bf16.msra.mxu0 %v3218_v19  ;;  %v4484_v19 = vunpack.c.l.bf16 %v4043_v57  ;;  %v4489_v57 = vunpack.c.h.bf16 %v4009_v33 }
 0x442   : > { %2918 = vmatprep.subr.bf16.mxu0 %v3219_v38 }
 0x444   : > { %1783 = vbcast.lane.b32.xlu1 %v1777_v41, 264  ;;  %1801 = vbcast.lane.b32.xlu0 %v1799_v26, 256 }
 0x445   : > { %2919 = vmatpush3.bf16.msra.mxu0 %v3220_v2 }
 0x446   : > { %2920 = vmatprep.subr.bf16.mxu0 %v3221_v44  ;;  %v4485_v44 = vunpack.c.h.bf16 %v3984_v14 }
 0x448   : > { %1794 = vbcast.lane.b32.xlu1 %v1788_v59, 264  ;;  %1812 = vbcast.lane.b32.xlu0 %v1810_v53, 256 }
 0x449   : > { %2921 = vmatpush3.bf16.msra.mxu0 %v3222_v45 }
 0x44a   : > { %2922 = vmatprep.subr.bf16.mxu0 %v3223_v50 }
 0x44c   : > { %1805 = vbcast.lane.b32.xlu1 %v1799_v26, 264  ;;  %1823 = vbcast.lane.b32.xlu0 %v1821_v42, 256 }
 0x44d   : > { %2923 = vmatpush3.bf16.msra.mxu0 %v3224_v62 }
 0x450   : > { %1816 = vbcast.lane.b32.xlu1 %v1810_v53, 264  ;;  %1834 = vbcast.lane.b32.xlu0 %v1832_v31, 256 }
 0x454   : > { %1827 = vbcast.lane.b32.xlu1 %v1821_v42, 264  ;;  %1845 = vbcast.lane.b32.xlu0 %v1843_v60, 256 }
 0x458   : > { %1838 = vbcast.lane.b32.xlu1 %v1832_v31, 264  ;;  %1856 = vbcast.lane.b32.xlu0 %v1854_v23, 256 }
 0x45c   : > { %1849 = vbcast.lane.b32.xlu1 %v1843_v60, 264  ;;  %1867 = vbcast.lane.b32.xlu0 %v1865_v21, 256 }
 0x460   : > { %1860 = vbcast.lane.b32.xlu1 %v1854_v23, 264  ;;  %1878 = vbcast.lane.b32.xlu0 %v1876_v16, 256 }
 0x464   : > { %1871 = vbcast.lane.b32.xlu1 %v1865_v21, 264  ;;  %1889 = vbcast.lane.b32.xlu0 %v1887_v27, 256 }
 0x468   : > { %1882 = vbcast.lane.b32.xlu1 %v1876_v16, 264 }
 0x46c   : > { %1893 = vbcast.lane.b32.xlu1 %v1887_v27, 264 }
 0x49e   : > { %v1729_v43 = vpop.permute.xlu1 %1728  ;;  %v1725_v20 = vpop.permute.xlu0 %1724 }
 0x49f   : > { %v1896_v5 = vmul.f32 %v2814_v11, %v1729_v43  ;;  %v1895_v6 = vmul.f32 %v2813_v4, %v1725_v20  ;;  %v4486_v43 = vunpack.c.l.bf16 %v4019_v39 }
 0x4a1   : > { %v1927_v59 = vadd.f32 %v1896_v5, %v1895_v6  ;;  %v4490_v5 = vunpack.c.h.bf16 %v4066_v25 }
 0x4a2   : > { %v1736_v47 = vpop.permute.xlu1 %1735  ;;  %v1747_v17 = vpop.permute.xlu0 %1746 }
 0x4a3   : > { %v1897_v26 = vmul.f32 %v2817_v9, %v1736_v47  ;;  %v1928_v53 = vrot.slane %v1927_v59, 4  ;;  %v1899_v27 = vmul.f32 %v4482_v0, %v1747_v17  ;;  %v4487_v47 = vunpack.c.h.bf16 %v4019_v39 }
 0x4a5   : > { %v1929_v23 = vadd.f32 %v1928_v53, %v1927_v59  ;;  %v4492_v53 = vunpack.c.h.bf16 %v4075_v36 }
 0x4a6   : > { %v1740_v15 = vpop.permute.xlu1 %1739  ;;  %v1758_v12 = vpop.permute.xlu0 %1757 }
 0x4a7   : > { %v1898_v51 = vmul.f32 %v2818_v18, %v1740_v15  ;;  %v1930_v4 = vrot.slane %v1929_v23, 2  ;;  %v1901_v38 = vmul.f32 %v4484_v19, %v1758_v12  ;;  %v4488_v15 = vunpack.c.l.bf16 %v4009_v33 }
 0x4a9   : > { %v1934_v42 = vadd.f32 %v1898_v51, %v1897_v26  ;;  %v1931_v49 = vadd.f32 %v1930_v4, %v1929_v23 }
 0x4aa   : > { %v1751_v24 = vpop.permute.xlu1 %1750  ;;  %v1769_v52 = vpop.permute.xlu0 %1768 }
 0x4ab   : > { %v1935_v11 = vrot.slane %v1934_v42, 4  ;;  %v1900_v61 = vmul.f32 %v2822_v35, %v1751_v24  ;;  %v1932_v8 = vrot.slane %v1931_v49, 1  ;;  %v1903_v24 = vmul.f32 %v4488_v15, %v1769_v52 }
 0x4ac   : > { %v4494_v52 = vunpack.c.h.bf16 %v4116_v54 }
 0x4ad   : > { %v1936_v16 = vadd.f32 %v1935_v11, %v1934_v42  ;;  %v1941_v9 = vadd.f32 %v1900_v61, %v1899_v27  ;;  %v1933_v51 = vadd.f32 %v1932_v8, %v1931_v49  ;;  %v4493_v11 = vunpack.c.l.bf16 %v4066_v25 }
 0x4ae   : > { %v1762_v41 = vpop.permute.xlu1 %1761  ;;  %v1780_v13 = vpop.permute.xlu0 %1779  ;;  %v4498_v25 = vunpack.c.l.bf16 %v4116_v54 }
 0x4af   : > { %v1937_v30 = vrot.slane %v1936_v16, 2  ;;  %v1902_v28 = vmul.f32 %v4483_v37, %v1762_v41  ;;  %v1942_v2 = vrot.slane %v1941_v9, 4  ;;  %v4491_v41 = vunpack.c.l.bf16 %v3984_v14 }
 0x4b0   : > { %v1905_v4 = vmul.f32 %v4493_v11, %v1780_v13  ;;  %v4495_v14 = vunpack.c.l.bf16 %v4075_v36  ;;  %v2040_v36 = vpack.c.bf16 %v1933_v51, %v1933_v51 }
 0x4b1   : > { %v1938_v35 = vadd.f32 %v1937_v30, %v1936_v16  ;;  %v1948_v62 = vadd.f32 %v1902_v28, %v1901_v38  ;;  %v1943_v26 = vadd.f32 %v1942_v2, %v1941_v9 }
 0x4b2   : > { %v1773_v29 = vpop.permute.xlu1 %1772  ;;  %v1791_v48 = vpop.permute.xlu0 %1790 }
 0x4b3   : > { %v1904_v12 = vmul.f32 %v4489_v57, %v1773_v29  ;;  %v1939_v39 = vrot.slane %v1938_v35, 1  ;;  %v1944_v30 = vrot.slane %v1943_v26, 2 }
 0x4b5   : > { %v1955_v49 = vadd.f32 %v1904_v12, %v1903_v24 }
 0x4b6   : > { %v1784_v31 = vpop.permute.xlu1 %1783  ;;  %v1802_v60 = vpop.permute.xlu0 %1801 }
 0x4b7   : > { %v1906_v6 = vmul.f32 %v4490_v5, %v1784_v31  ;;  %v1949_v31 = vrot.slane %v1948_v62, 4  ;;  %v1909_v13 = vmul.f32 %v4498_v25, %v1802_v60  ;;  %v4501_v5 = vunpack.c.l.bf16 %v4056_v10 }
 0x4b9   : > { %v1962_v9 = vadd.f32 %v1906_v6, %v1905_v4  ;;  %v1950_v38 = vadd.f32 %v1949_v31, %v1948_v62 }
 0x4ba   : > { %v1795_v21 = vpop.permute.xlu1 %1794  ;;  %v1813_v1 = vpop.permute.xlu0 %1812 }
 0x4bb   : > { %v1911_v59 = vmul.f32 %v4491_v41, %v1813_v1  ;;  %v1908_v42 = vmul.f32 %v4492_v53, %v1795_v21  ;;  %v1907_v1 = vmul.f32 %v4495_v14, %v1791_v48  ;;  %v4497_v21 = vunpack.c.h.bf16 %v4032_v46 }
 0x4bc   : > { %v1940_v48 = vadd.f32 %v1939_v39, %v1938_v35  ;;  %v4300_v35 = vunpack.c.l.b16 %v2040_v36  ;;  %v1951_v62 = vrot.slane %v1950_v38, 2 }
 0x4be   : > { %v1806_v58 = vpop.permute.xlu1 %1805  ;;  %v1824_v18 = vpop.permute.xlu0 %1823  ;;  %v1952_v31 = vadd.f32 %v1951_v62, %v1950_v38 }
 0x4bf   : > { %v1913_v20 = vmul.f32 %v4486_v43, %v1824_v18  ;;  %v1910_v33 = vmul.f32 %v4494_v52, %v1806_v58  ;;  %v4496_v18 = vunpack.c.l.bf16 %v4032_v46  ;;  %v1969_v58 = vadd.f32 %v1908_v42, %v1907_v1 }
 0x4c0   : > { %v4499_v46 = vunpack.c.l.bf16 %v4088_v55  ;;  %v1945_v43 = vadd.f32 %v1944_v30, %v1943_v26  ;;  %v4504_v1 = vunpack.c.h.bf16 %v4098_v40 }
 0x4c1   : > { %v1976_v28 = vadd.f32 %v1910_v33, %v1909_v13 }
 0x4c2   : > { %v1817_v32 = vpop.permute.xlu1 %1816  ;;  %v1835_v7 = vpop.permute.xlu0 %1834  ;;  %v1946_v53 = vrot.slane %v1945_v43, 1 }
 0x4c3   : > { %v1912_v45 = vmul.f32 %v4485_v44, %v1817_v32  ;;  %v1915_v0 = vmul.f32 %v4496_v18, %v1835_v7  ;;  %v1956_v7 = vrot.slane %v1955_v49, 4  ;;  %v1963_v44 = vrot.slane %v1962_v9, 4 }
 0x4c5   : > { %v1983_v29 = vadd.f32 %v1912_v45, %v1911_v59  ;;  %v1957_v59 = vadd.f32 %v1956_v7, %v1955_v49  ;;  %v1964_v51 = vadd.f32 %v1963_v44, %v1962_v9  ;;  %v4505_v7 = vunpack.c.l.bf16 %v4107_v34 }
 0x4c6   : > { %v1828_v50 = vpop.permute.xlu1 %1827  ;;  %v1846_v22 = vpop.permute.xlu0 %1845 }
 0x4c7   : > { %v1914_v17 = vmul.f32 %v4487_v47, %v1828_v50  ;;  %v1984_v8 = vrot.slane %v1983_v29, 4  ;;  %v1917_v45 = vmul.f32 %v4499_v46, %v1846_v22  ;;  %v4500_v50 = vunpack.c.h.bf16 %v4088_v55 }
 0x4c8   : > { %v4502_v22 = vunpack.c.h.bf16 %v4056_v10  ;;  %v2041_v55 = vpack.c.bf16 %v1940_v48, %v1940_v48 }
 0x4c9   : > { %v1990_v23 = vadd.f32 %v1914_v17, %v1913_v20  ;;  %v1970_v20 = vrot.slane %v1969_v58, 4  ;;  %v1977_v17 = vrot.slane %v1976_v28, 4  ;;  %v1985_v15 = vadd.f32 %v1984_v8, %v1983_v29 }
 0x4ca   : > { %v1839_v61 = vpop.permute.xlu1 %1838  ;;  %v1857_v16 = vpop.permute.xlu0 %1856 }
 0x4cb   : > { %v1916_v27 = vmul.f32 %v4497_v21, %v1839_v61  ;;  %v1991_v32 = vrot.slane %v1990_v23, 4  ;;  %v1919_v6 = vmul.f32 %v4501_v5, %v1857_v16  ;;  %v1971_v42 = vadd.f32 %v1970_v20, %v1969_v58 }
 0x4cc   : > { %v1978_v11 = vadd.f32 %v1977_v17, %v1976_v28  ;;  %v1986_v4 = vrot.slane %v1985_v15, 2  ;;  %v4503_v16 = vunpack.c.l.bf16 %v4098_v40  ;;  %v1958_v21 = vrot.slane %v1957_v59, 2 }
 0x4cd   : > { %v1997_v37 = vadd.f32 %v1916_v27, %v1915_v0  ;;  %v1992_v47 = vadd.f32 %v1991_v32, %v1990_v23  ;;  %v4310_v0 = vunpack.c.l.b16 %v2041_v55  ;;  %v1965_v27 = vrot.slane %v1964_v51, 2 }
 0x4ce   : > { %v1850_v19 = vpop.permute.xlu1 %1849  ;;  %v1868_v60 = vpop.permute.xlu0 %1867  ;;  %v1972_v9 = vrot.slane %v1971_v42, 2  ;;  %v1947_v58 = vadd.f32 %v1946_v53, %v1945_v43  ;;  %v1979_v32 = vrot.slane %v1978_v11, 2  ;;  %v1959_v40 = vadd.f32 %v1958_v21, %v1957_v59 }
 0x4cf   : > { %v1998_v2 = vrot.slane %v1997_v37, 4  ;;  %v1918_v54 = vmul.f32 %v4500_v50, %v1850_v19  ;;  %v1993_v23 = vrot.slane %v1992_v47, 2  ;;  %v1921_v14 = vmul.f32 %v4503_v16, %v1868_v60 }
 0x4d0   : > { %v1953_v19 = vrot.slane %v1952_v31, 1  ;;  %v4507_v5 = vunpack.c.l.bf16 %v4125_v56 }
 0x4d1   : > { %v1999_v24 = vadd.f32 %v1998_v2, %v1997_v37  ;;  %v2004_v57 = vadd.f32 %v1918_v54, %v1917_v45  ;;  %v1994_v25 = vadd.f32 %v1993_v23, %v1992_v47  ;;  %v1987_v37 = vadd.f32 %v1986_v4, %v1985_v15 }
 0x4d2   : > { %v1861_v12 = vpop.permute.xlu1 %1860  ;;  %v1879_v29 = vpop.permute.xlu0 %1878  ;;  %v1966_v2 = vadd.f32 %v1965_v27, %v1964_v51  ;;  %v4506_v45 = vunpack.c.h.bf16 %v4107_v34  ;;  %v1973_v54 = vadd.f32 %v1972_v9, %v1971_v42  ;;  %v1980_v47 = vadd.f32 %v1979_v32, %v1978_v11 }
 0x4d3   : > { %v1920_v41 = vmul.f32 %v4502_v22, %v1861_v12  ;;  %v2005_v26 = vrot.slane %v2004_v57, 4  ;;  %v2000_v52 = vrot.slane %v1999_v24, 2  ;;  %v1923_v44 = vmul.f32 %v4505_v7, %v1879_v29 }
 0x4d4   : > { %v1995_v60 = vrot.slane %v1994_v25, 1  ;;  %v1988_v17 = vrot.slane %v1987_v37, 1  ;;  %v4508_v22 = vunpack.c.h.bf16 %v4125_v56  ;;  %v1954_v55 = vadd.f32 %v1953_v19, %v1952_v31 }
 0x4d5   : > { %v2011_v39 = vadd.f32 %v1920_v41, %v1919_v6  ;;  %v2006_v33 = vadd.f32 %v2005_v26, %v2004_v57  ;;  %v2001_v28 = vadd.f32 %v2000_v52, %v1999_v24  ;;  %v1960_v34 = vrot.slane %v1959_v40, 1 }
 0x4d6   : > { %v1872_v61 = vpop.permute.xlu1 %1871  ;;  %v1890_v46 = vpop.permute.xlu0 %1889  ;;  %v1967_v26 = vrot.slane %v1966_v2, 1  ;;  %v1996_v53 = vadd.f32 %v1995_v60, %v1994_v25  ;;  %v1981_v11 = vrot.slane %v1980_v47, 1 }
 0x4d7   : > { %v2012_v10 = vrot.slane %v2011_v39, 4  ;;  %v1922_v18 = vmul.f32 %v4504_v1, %v1872_v61  ;;  %v2007_v49 = vrot.slane %v2006_v33, 2  ;;  %v2002_v15 = vrot.slane %v2001_v28, 1 }
 0x4d8   : > { %v1925_v6 = vmul.f32 %v4507_v5, %v1890_v46  ;;  %v1968_v31 = vadd.f32 %v1967_v26, %v1966_v2 }
 0x4d9   : > { %v2013_v13 = vadd.f32 %v2012_v10, %v2011_v39  ;;  %v2018_v30 = vadd.f32 %v1922_v18, %v1921_v14  ;;  %v2008_v36 = vadd.f32 %v2007_v49, %v2006_v33  ;;  %v1974_v39 = vrot.slane %v1973_v54, 1 }
 0x4da   : > { %v1883_v8 = vpop.permute.xlu1 %1882  ;;  %v2003_v4 = vadd.f32 %v2002_v15, %v2001_v28  ;;  %v1989_v33 = vadd.f32 %v1988_v17, %v1987_v37  ;;  %v2042_v14 = vpack.c.bf16 %v1947_v58, %v1947_v58  ;;  %v1961_v10 = vadd.f32 %v1960_v34, %v1959_v40 }
 0x4db   : > { %v2014_v48 = vrot.slane %v2013_v13, 2  ;;  %v2019_v38 = vrot.slane %v2018_v30, 4  ;;  %v1924_v50 = vmul.f32 %v4506_v45, %v1883_v8  ;;  %v2009_v12 = vrot.slane %v2008_v36, 1 }
 0x4dc   : > { %v2049_v18 = vpack.c.bf16 %v1996_v53, %v1996_v53  ;;  %v2043_v49 = vpack.c.bf16 %v1954_v55, %v1954_v55  ;;  %v1975_v9 = vadd.f32 %v1974_v39, %v1973_v54  ;;  %v2050_v25 = vpack.c.bf16 %v2003_v4, %v2003_v4 }
 0x4dd   : > { %v2015_v43 = vadd.f32 %v2014_v48, %v2013_v13  ;;  %v2020_v20 = vadd.f32 %v2019_v38, %v2018_v30  ;;  %v2025_v24 = vadd.f32 %v1924_v50, %v1923_v44  ;;  %v2010_v29 = vadd.f32 %v2009_v12, %v2008_v36 }
 0x4de   : > { %v1894_v57 = vpop.permute.xlu1 %1893  ;;  %v1982_v30 = vadd.f32 %v1981_v11, %v1980_v47  ;;  %v2048_v32 = vpack.c.bf16 %v1989_v33, %v1989_v33  ;;  %v2074_v37 = vunpack.c.l.b16 %v2042_v14  ;;  %v2044_v19 = vpack.c.bf16 %v1961_v10, %v1961_v10 }
 0x4df   : > { %v2021_v62 = vrot.slane %v2020_v20, 2  ;;  %v1926_v41 = vmul.f32 %v4508_v22, %v1894_v57  ;;  %v2016_v59 = vrot.slane %v2015_v43, 1  ;;  %v2026_v51 = vrot.slane %v2025_v24, 4 }
 0x4e0   : > { %v2051_v28 = vpack.c.bf16 %v2010_v29, %v2010_v29  ;;  %v2045_v58 = vpack.c.bf16 %v1968_v31, %v1968_v31  ;;  %v2081_v38 = vunpack.c.l.b16 %v2049_v18  ;;  %v2075_v2 = vunpack.c.l.b16 %v2043_v49 }
 0x4e1   : > { %v2022_v42 = vadd.f32 %v2021_v62, %v2020_v20  ;;  %v2032_v23 = vadd.f32 %v1926_v41, %v1925_v6  ;;  %v2027_v52 = vadd.f32 %v2026_v51, %v2025_v24  ;;  %v2017_v56 = vadd.f32 %v2016_v59, %v2015_v43 }
 0x4e2   : > { %v2046_v44 = vpack.c.bf16 %v1975_v9, %v1975_v9  ;;  %v2082_v46 = vunpack.c.l.b16 %v2050_v25  ;;  %v2047_v50 = vpack.c.bf16 %v1982_v30, %v1982_v30  ;;  %v2080_v54 = vunpack.c.l.b16 %v2048_v32 }
 0x4e3   : > { %v2023_v61 = vrot.slane %v2022_v42, 1  ;;  %v2033_v16 = vrot.slane %v2032_v23, 4  ;;  %v2028_v1 = vrot.slane %v2027_v52, 2  ;;  %v2052_v36 = vpack.c.bf16 %v2017_v56, %v2017_v56 }
 0x4e4   : > { %v2083_v60 = vunpack.c.l.b16 %v2051_v28  ;;  %v2088_v20 = vsel %vm1671_vm3, %v4310_v0, %v4300_v35  ;;  %v2076_v47 = vunpack.c.l.b16 %v2044_v19  ;;  %v2077_v24 = vunpack.c.l.b16 %v2045_v58 }
 0x4e5   : > { %v2024_v21 = vadd.f32 %v2023_v61, %v2022_v42  ;;  %v2034_v27 = vadd.f32 %v2033_v16, %v2032_v23  ;;  %v2029_v13 = vadd.f32 %v2028_v1, %v2027_v52  ;;  %v2084_v17 = vunpack.c.l.b16 %v2052_v36  ;;  %v2774_v61 = vld [vmem:[%s4414_s8] ss:$0 sm:$0xff] }
 0x4e6   : > { %v2095_v57 = vsel %vm1671_vm3, %v2081_v38, %v2080_v54  ;;  %v2089_v5 = vsel %vm1673_vm4, %v2074_v37, %v2088_v20  ;;  %v2078_v6 = vunpack.c.l.b16 %v2046_v44  ;;  %v2079_v34 = vunpack.c.l.b16 %v2047_v50 }
 0x4e7   : > { %v2035_v8 = vrot.slane %v2034_v27, 2  ;;  %v2030_v48 = vrot.slane %v2029_v13, 1  ;;  %v2053_v40 = vpack.c.bf16 %v2024_v21, %v2024_v21  ;;  %v2096_v22 = vsel %vm1673_vm4, %v2082_v46, %v2095_v57 }
 0x4e8   : > { %v2090_v59 = vsel %vm1675_vm5, %v2075_v2, %v2089_v5  ;;  %v2097_v35 = vsel %vm1675_vm5, %v2083_v60, %v2096_v22  ;;  %v4509_v33 = vpack.c.bf16 %v3963_v3, %v3956_v63 }
 0x4e9   : > { %v2036_v7 = vadd.f32 %v2035_v8, %v2034_v27  ;;  %v2031_v45 = vadd.f32 %v2030_v48, %v2029_v13  ;;  %v2085_v12 = vunpack.c.l.b16 %v2053_v40  ;;  %v2091_v0 = vsel %vm1677_vm6, %v2076_v47, %v2090_v59 }
 0x4ea   : > { %v2098_v51 = vsel %vm1677_vm6, %v2084_v17, %v2097_v35  ;;  %v2092_v53 = vsel %vm1679_vm7, %v2077_v24, %v2091_v0 }
 0x4eb   : > { %v2037_v43 = vrot.slane %v2036_v7, 1  ;;  %v2054_v15 = vpack.c.bf16 %v2031_v45, %v2031_v45  ;;  %v2099_v42 = vsel %vm1679_vm7, %v2085_v12, %v2098_v51  ;;  %v2093_v23 = vsel %vm1681_vm8, %v2078_v6, %v2092_v53 }
 0x4ec   : > { %v2094_v11 = vsel %vm1683_vm9, %v2079_v34, %v2093_v23 }
 0x4ed   : > { %v2038_v62 = vadd.f32 %v2037_v43, %v2036_v7  ;;  %v2086_v41 = vunpack.c.l.b16 %v2054_v15 }
 0x4ef   : > { %v2055_v55 = vpack.c.bf16 %v2038_v62, %v2038_v62  ;;  %v2100_v39 = vsel %vm1681_vm8, %v2086_v41, %v2099_v42 }
 0x4f1   : > { %v2087_v26 = vunpack.c.l.b16 %v2055_v55 }
 0x4f3   : > { %v2101_v4 = vsel %vm1683_vm9, %v2087_v26, %v2100_v39 }
 0x4f4   : > { %v2102_v52 = vpack.c.b16 %v2101_v4, %v2094_v11 }
 0x4f6   : > { %2271 = vmatprep.mubr.bf16.mxu0 %v2102_v52 }
 0x4f7   : > { %2272 = vmatmul.mubr.bf16.vlgmr.msra.gmra.mrb[4].mxu0 %v4509_v33 }
 0x5ca   : > { %v2924_v29 = vpop.f32.mrb[4].mxu0 }
 0x5cb   : > { %v2925_v16 = vpop.f32.mrb[5].mxu0 }
 0x5cc   : > { %v2926_v14 = vadd.f32 %v2925_v16, %v2924_v29  ;;  %v2927_v10 = vpop.f32.mrb[6].mxu0 }
 0x5cd   : > { %v2928_v56 = vpop.f32.mrb[7].mxu0 }
 0x5ce   : > { %v2274_v1 = vadd.f32 %v2926_v14, %v2774_v61  ;;  %v2929_v31 = vadd.f32 %v2928_v56, %v2927_v10 }
 0x5d0   : > { %v2277_v18 = vadd.f32 %v2929_v31, %v2774_v61  ;;  %3253 = vtanh.f32 %v2274_v1 }
 0x5d2   : > { %3255 = vtanh.f32 %v2277_v18 }
 0x5da   : > { %v3254_v21 = vpop.eup %3253 }
 0x5dc   : > { %v3256_v27 = vpop.eup %3255 }
 0x5dd   : > { %v2282_v49 = vpack.c.bf16 %v3256_v27, %v3254_v21 }
 0x5df   : > { %2283 = vst [vmem:[#allocation2] sm:$0xff] %v2282_v49 }
 0x5e0 PF: > { %p2791_p9 = scmp.ne.s32.totalorder %s3575_s21, 0 }
 0x5e1   : > { %v3259_v63 = vld [vmem:[#allocation17] sm:$0xff] (!%p2791_p9)   ;;  %v3603_v3 = vmov (!%p2791_p9), 0.0   ;;  %v3260_v9 = vld [vmem:[#allocation17 + $0x8] sm:$0xff] (!%p2791_p9)   ;;  %vm3604_vm12 = vmmov (!%p2791_p9), 0   ;;  %v3261_v25 = vld [vmem:[#allocation17 + $0x10] sm:$0xff] (!%p2791_p9)   ;;  %v3605_v2 = vmov (!%p2791_p9), 0  }
 0x5e2   : > { %2291 = sbr.rel (%p2791_p9) target bundleno = 2188 (0x88c), region = 100  ;;  %2979 = vmatprep.subr.bf16.mxu0 (!%p2791_p9), %v3603_v3  ;;  %2995 = vmatprep.mubr.msk.bf16.mxu0 (!%p2791_p9), %vm3604_vm12, %v3603_v3  ;;  %v3262_v13 = vld [vmem:[#allocation17 + $0x18] sm:$0xff] (!%p2791_p9)   ;;  %v3263_v30 = vld [vmem:[#allocation17 + $0x20] sm:$0xff] (!%p2791_p9)   ;;  %v3264_v32 = vld [vmem:[#allocation17 + $0x28] sm:$0xff] (!%p2791_p9)   ;;  %vm2449_vm13 = vcmask (!%p2791_p9), 7168  }
 0x5e3   : > { %2980 = vmatpush3.bf16.msra.mxu0 (!%p2791_p9), %v3259_v63  ;;  %v3265_v28 = vld [vmem:[#allocation17 + $0x30] sm:$0xff] (!%p2791_p9)   ;;  %v3266_v8 = vld [vmem:[#allocation17 + $0x38] sm:$0xff] (!%p2791_p9)   ;;  %3257 = vset.pattern.permute.xlu1 (!%p2791_p9), %v3605_v2  ;;  %v2413_v44 = vld [vmem:[#allocation4] sm:$0xff] (!%p2791_p9) }
 0x5e4   : > { %2981 = vmatprep.subr.bf16.mxu0 (!%p2791_p9), %v3603_v3  ;;  %v2792_v19 = vld [vmem:[%s4416_s10] ss:$0 sm:$0xff] (!%p2791_p9)  ;;  %3258 = vset.pattern.permute.xlu0 (!%p2791_p9), %v3605_v2  ;;  %v2417_v55 = vld [vmem:[#allocation5] sm:$0xff] (!%p2791_p9)  ;;  %v2418_v0 = vld [vmem:[#allocation5 + $0x8] sm:$0xff] (!%p2791_p9) }
 0x5e5   : > { %v2414_v50 = vld [vmem:[#allocation4 + $0x8] sm:$0xff] (!%p2791_p9) }
 0x5e6   : > { %v2292_v37 = vld [vmem:[#allocation2] sm:$0xff] (!%p2791_p9) }
 0x5e7   : > { %2982 = vmatpush3.bf16.msra.mxu0 (!%p2791_p9), %v3260_v9 }
 0x5e8   : > { %2983 = vmatprep.subr.bf16.mxu0 (!%p2791_p9), %v3603_v3 }
 0x5eb   : > { %2984 = vmatpush3.bf16.msra.mxu0 %v3261_v25 }
 0x5ec   : > { %2985 = vmatprep.subr.bf16.mxu0 %v3603_v3 }
 0x5ef   : > { %2986 = vmatpush3.bf16.msra.mxu0 %v3262_v13 }
 0x5f0   : > { %2987 = vmatprep.subr.bf16.mxu0 %v3603_v3 }
 0x5f3   : > { %2988 = vmatpush3.bf16.msra.mxu0 %v3263_v30 }
 0x5f4   : > { %2989 = vmatprep.subr.bf16.mxu0 %v3603_v3 }
 0x5f7   : > { %2990 = vmatpush3.bf16.msra.mxu0 %v3264_v32 }
 0x5f8   : > { %2991 = vmatprep.subr.bf16.mxu0 %v3603_v3 }
 0x5fb   : > { %2992 = vmatpush3.bf16.msra.mxu0 %v3265_v28 }
 0x5fc   : > { %2993 = vmatprep.subr.bf16.mxu0 %v3603_v3 }
 0x5ff   : > { %2994 = vmatpush3.bf16.msra.mxu0 %v3266_v8 }
 0x602   : > { %2996 = vmatmul.mubr.bf16.vlgmr.msra.gmra.mrb[0].mxu0 %v2292_v37 }
 0x6d5   : > { %v2398_v36 = vpop.f32.mrb[0].mxu0 }
 0x6d6   : > { %v2399_v48 = vadd.f32 %v2792_v19, %v2398_v36  ;;  %v2997_v58 = vpop.f32.mrb[1].mxu0 }
 0x6d7   : > { %v2401_v38 = vpop.f32.mrb[2].mxu0 }
 0x6d8   : > { %2407 = vst [vmem:[#allocation3] sm:$0xff] %v2399_v48  ;;  %v2402_v40 = vadd.f32 %v2792_v19, %v2401_v38  ;;  %2409 = vmax.xlane.f32.xlu0 %v2399_v48  ;;  %v2998_v7 = vpop.f32.mrb[3].mxu0 }
 0x6da   : > { %2408 = vst [vmem:[#allocation3 + $0x8] sm:$0xff] %v2402_v40 }
 0x6dc   : > { %2411 = vmax.xlane.f32.xlu0 %v2402_v40 }
 0x765   : > { %v2410_v46 = vpop.xlane.xlu0 %2409 }
 0x766   : > { %v2415_v45 = vmax.f32 %v2413_v44, %v2410_v46 }
 0x768   : > { %v2419_v54 = vsub.f32 %v2413_v44, %v2415_v45  ;;  %2452 = vst.msk [vmem:[#allocation4] sm:$0xff] %vm2449_vm13, %v2415_v45  ;;  %2429 = vperm.xlu1 %3257, %v2415_v45  }
 0x769   : > { %v2412_v60 = vpop.xlane.xlu0 %2411 }
 0x76a   : > { %v2416_v43 = vmax.f32 %v2414_v50, %v2412_v60  ;;  %v2421_v6 = vmul.f32 1.442695, %v2419_v54 }
 0x76c   : > { %v2420_v20 = vsub.f32 %v2414_v50, %v2416_v43  ;;  %2453 = vst.msk [vmem:[#allocation4 + $0x8] sm:$0xff] %vm2449_vm13, %v2416_v43  ;;  %2434 = vperm.xlu1 %3257, %v2416_v43  }
 0x76e   : > { %v2423_v22 = vmul.f32 1.442695, %v2420_v20 }
 0x7e7   : > { %v2430_v47 = vpop.permute.xlu1 %2429 }
 0x7e8   : > { %v2437_v17 = vsub.f32 %v2399_v48, %v2430_v47 }
 0x7ea   : > { %v2439_v15 = vmul.f32 1.442695, %v2437_v17 }
 0x7eb   : > { %v2435_v24 = vpop.permute.xlu1 %2434 }
 0x7ec   : > { %3267 = vpow2.f32 %v2439_v15  ;;  %v2438_v57 = vsub.f32 %v2402_v40, %v2435_v24 }
 0x7ee   : > { %v2441_v12 = vmul.f32 1.442695, %v2438_v57 }
 0x7f0   : > { %3269 = vpow2.f32 %v2441_v12 }
 0x7f1   : > { %3271 = vpow2.f32 %v2421_v6 }
 0x7f2   : > { %3273 = vpow2.f32 %v2423_v22 }
 0x7f6   : > { %v3268_v62 = vpop.eup %3267 }
 0x7f7   : > { %2443 = vadd.xlane.f32.xlu0 %v3268_v62 }
 0x7fa   : > { %v3270_v5 = vpop.eup %3269 }
 0x7fb   : > { %2445 = vadd.xlane.f32.xlu1 %v3270_v5  ;;  %v3272_v41 = vpop.eup %3271 }
 0x7fc   : > { %v2425_v34 = vmul.f32 %v3272_v41, %v2417_v55  ;;  %v3274_v59 = vpop.eup %3273 }
 0x7fd   : > { %v2426_v26 = vmul.f32 %v3274_v59, %v2418_v0 }
 0x884   : > { %v2444_v35 = vpop.xlane.xlu0 %2443 }
 0x885   : > { %v2447_v51 = vadd.f32 %v2444_v35, %v2425_v34 }
 0x887   : > { %2450 = vst.msk [vmem:[#allocation5] sm:$0xff] %vm2449_vm13, %v2447_v51 }
 0x888   : > { %v2446_v53 = vpop.xlane.xlu1 %2445 }
 0x889   : > { %v2448_v42 = vadd.f32 %v2446_v53, %v2426_v26 }
 0x88b   : > { %2451 = vst.msk [vmem:[#allocation5 + $0x8] sm:$0xff] %vm2449_vm13, %v2448_v42 }
 0x88c PF: > { %p2454_p6 = scmp.eq.s32.totalorder %s3575_s21, 1 }
 0x88d   : > { %vm2465_vm14 = vcmask (%p2454_p6), 7168  }
 0x88e   : > { %2458 = sbr.rel (!%p2454_p6) target bundleno = 2207 (0x89f), region = 104  ;;  %v2459_v23 = vld [vmem:[#allocation5] sm:$0xff] (%p2454_p6) }
 0x88f   : > { %3275 = vrcp.f32 (%p2454_p6), %v2459_v23 }
 0x892   : > { %v2460_v39 = vld [vmem:[#allocation5 + $0x8] sm:$0xff] (%p2454_p6) }
 0x893   : > { %3277 = vrcp.f32 (%p2454_p6), %v2460_v39 }
 0x899   : > { %v3276_v11 = vpop.eup %3275 }
 0x89a   : > { %2466 = vst.msk [vmem:[#allocation5] sm:$0xff] %vm2465_vm14, %v3276_v11 }
 0x89d   : > { %v3278_v4 = vpop.eup %3277 }
 0x89e   : > { %2467 = vst.msk [vmem:[#allocation5 + $0x8] sm:$0xff] %vm2465_vm14, %v3278_v4 }
 0x89f PF: > { %p2802_p7 = scmp.ne.s32.totalorder %s3575_s21, 1 }
 0x8a0   : > { %v2475_v52 = vld [vmem:[#allocation4] sm:$0xff] (!%p2802_p7)  ;;  %v3606_v29 = vmov (!%p2802_p7), 0   ;;  %v2476_v61 = vld [vmem:[#allocation4 + $0x8] sm:$0xff] (!%p2802_p7)  ;;  %v2473_v14 = vld [vmem:[#allocation3] sm:$0xff] (!%p2802_p7) }
 0x8a1   : > { %2470 = sbr.rel (%p2802_p7) target bundleno = 2360 (0x938), region = 108  ;;  %v2493_v33 = vld [vmem:[#allocation5] sm:$0xff] (!%p2802_p7)  ;;  %3279 = vset.pattern.permute.xlu0 (!%p2802_p7), %v3606_v29  ;;  %3280 = vset.pattern.permute.xlu1 (!%p2802_p7), %v3606_v29  ;;  %v2474_v1 = vld [vmem:[#allocation3 + $0x8] sm:$0xff] (!%p2802_p7) }
 0x8a2   : > { %2479 = vperm.xlu0 (!%p2802_p7), %3279, %v2475_v52   ;;  %2497 = vperm.xlu1 (!%p2802_p7), %3280, %v2493_v33  }
 0x8a5   : > { %v2494_v16 = vld [vmem:[#allocation5 + $0x8] sm:$0xff] (!%p2802_p7) }
 0x8a6   : > { %2484 = vperm.xlu0 (!%p2802_p7), %3279, %v2476_v61   ;;  %2502 = vperm.xlu1 (!%p2802_p7), %3280, %v2494_v16  }
 0x921   : > { %v2480_v10 = vpop.permute.xlu0 %2479  ;;  %v2498_v49 = vpop.permute.xlu1 %2497 }
 0x922   : > { %v2487_v56 = vsub.f32 %v2473_v14, %v2480_v10 }
 0x924   : > { %v2489_v31 = vmul.f32 1.442695, %v2487_v56 }
 0x925   : > { %v2485_v18 = vpop.permute.xlu0 %2484  ;;  %v2503_v25 = vpop.permute.xlu1 %2502 }
 0x926   : > { %3281 = vpow2.f32 %v2489_v31  ;;  %v2488_v21 = vsub.f32 %v2474_v1, %v2485_v18 }
 0x928   : > { %v2491_v27 = vmul.f32 1.442695, %v2488_v21 }
 0x92a   : > { %3283 = vpow2.f32 %v2491_v27 }
 0x930   : > { %v3282_v63 = vpop.eup %3281 }
 0x931   : > { %v2505_v3 = vmul.f32 %v3282_v63, %v2498_v49 }
 0x933   : > { %2507 = vst [vmem:[#allocation19] sm:$0xff] %v2505_v3 }
 0x934   : > { %v3284_v9 = vpop.eup %3283 }
 0x935   : > { %v2506_v13 = vmul.f32 %v3284_v9, %v2503_v25 }
 0x937   : > { %2508 = vst [vmem:[#allocation19 + $0x8] sm:$0xff] %v2506_v13 }
 0x938 PF: > { %p3089_p3 = scmp.eq.s32.totalorder %s3692_s24, 1  ;;  %s3607_s21 = smov [#allocation18]  }
 0x939   : > { %s2520_s28 = sshll.u32 %s3607_s21, 4  ;;  %s2521_s28 = int_to_ptr.vmem [resolvable:$true] %s2520_s28 }
 0x93a   : > { %s3481_s13 = scalar_lea.vmem %s2521_s28, 256  ;;  %p3488_p12 = scmp.lt.s32.totalorder %s2521_s28, %s2521_s28 }
 0x93b   : > { %p3482_p8 = scmp.ne.s32.totalorder %s2521_s28, %s3481_s13  ;;  %p3489_p4 = scmp.lt.s32.totalorder %s3481_s13, %s3481_s13 }
 0x93d   : > { %p3483_p10 = pnand %p3482_p8, %p3089_p3  ;;  %p3490_p13 = por %p3489_p4, %p3488_p12 }
 0x93f   : > { %p3484_p11 = pneg %p3483_p10 }
 0x941   : > { %p3491_p0 = pnand %p3490_p13, %p3484_p11 }
 0x943   : > { %3494 = shalt.err (!%p3491_p0)
}
 0x944   : > { %s4510_s14 = sld [smem:[#allocation32_spill]] }
 0x94a   : > { %s3495_s18 = scalar_lea.hbm %s4510_s14, 256 }
 0x94b   : > { %p3496_p1 = scmp.ne.s32.totalorder %s4510_s14, %s3495_s18  ;;  %p3501_p9 = scmp.lt.u32.totalorder %s3495_s18, %s4510_s14 }
 0x94d   : > { %p3497_p2 = pnand %p3496_p1, %p3089_p3 }
 0x94f   : > { %p3498_p5 = pneg %p3497_p2 }
 0x951   : > { %p3503_p6 = pnand %p3501_p9, %p3498_p5 }
 0x953   : > { %3506 = shalt.err (!%p3503_p6)
}
 0x954   : > { %s3608_s0 = smov 128   ;;  %s3609_s16 = smov 8  }
 0x955   : > { %3040 = dma.vmem_to_hbm [thread:$0]  (%p3089_p3), %s2521_s28, 256, %s4510_s14, [#allocation8], %s3608_s0, %s3608_s0, %s3609_s16  }
 0x956   : > { %s3610_s1 = smov [#allocation19]  }
 0x957   : > { %s2536_s11 = sshll.u32 %s3610_s1, 4  ;;  %s2537_s11 = int_to_ptr.vmem [resolvable:$true] %s2536_s11 }
 0x958   : > { %s3507_s30 = scalar_lea.vmem %s2537_s11, 256  ;;  %s3513_s22 = scalar_lea.vmem %s2537_s11, 512 }
 0x959   : > { %p3508_p7 = scmp.ne.s32.totalorder %s2537_s11, %s3507_s30  ;;  %p3514_p11 = scmp.lt.s32.totalorder %s2537_s11, %s2537_s11 }
 0x95a   : > { %p3515_p12 = scmp.lt.s32.totalorder %s3513_s22, %s3507_s30 }
 0x95b   : > { %p3509_p8 = pnand %p3508_p7, %p3089_p3 }
 0x95c   : > { %p3516_p4 = por %p3515_p12, %p3514_p11 }
 0x95d   : > { %p3510_p10 = pneg %p3509_p8 }
 0x95f   : > { %p3517_p13 = pnand %p3516_p4, %p3510_p10 }
 0x961   : > { %3520 = shalt.err (!%p3517_p13)
}
 0x962   : > { %s4511_s13 = sld [smem:[#allocation33_spill]] }
 0x968   : > { %s3521_s25 = scalar_lea.hbm %s4511_s13, 256 }
 0x969   : > { %p3522_p0 = scmp.ne.s32.totalorder %s4511_s13, %s3521_s25  ;;  %p3527_p5 = scmp.lt.u32.totalorder %s3521_s25, %s4511_s13 }
 0x96b   : > { %p3523_p1 = pnand %p3522_p0, %p3089_p3 }
 0x96d   : > { %p3524_p2 = pneg %p3523_p1 }
 0x96f   : > { %p3529_p9 = pnand %p3527_p5, %p3524_p2 }
 0x971   : > { %3532 = shalt.err (!%p3529_p9)
}
 0x972   : > { %3042 = dma.vmem_to_hbm [thread:$0]  (%p3089_p3), %s2537_s11, 256, %s4511_s13, [#allocation20], %s3608_s0, %s3608_s0, %s3609_s16  }
 0x973   : > { %3566 = dma.done.wait (%p3089_p3), [#allocation8], 256  }
 0x974   : > { %3568 = vsyncadd (%p3089_p3), [#allocation8], 4294967040 }
 0x975 PF: > { %s4512_s27 = sadd.s32 4294967294, %s3583_s23   ;;  %p4513_p7 = scmp.ge.s32.totalorder %s3583_s23, 2 }
 0x976   : > { %p3093_p6 = scmp.eq.s32.totalorder %s4512_s27, 1 }
 0x978   : > { %p3071_p8 = pnand %p3093_p6, %p4513_p7 }
 0x97a   : > { %3570 = dma.done.wait (!%p3071_p8), [#allocation20], 256  }
 0x97b   : > { %3572 = vsyncadd (!%p3071_p8), [#allocation20], 4294967040  ;;  %s31_s23 = sadd.s32 1, %s3583_s23   ;;  %s4514_s21 = sld [smem:[#allocation28_spill]] }
 0x97c   : > { %p28_p10 = scmp.ge.s32.totalorder %s31_s23, 4   ;;  %s4515_s22 = sld [smem:[#allocation29_spill]] }
 0x97e   :  { %30 = sbr.rel (!%p28_p10) target bundleno = 13 (0xd), region = 162 }
 0x985   :  { %2561 = vsyncpa [#allocation7], 1 }
 0x986   :  { %2563 = vsyncpa [#allocation7 + $0x1], 1 }
 0x987   :  { %2564 = vsyncpa [#allocation10], 1 }
 0x988   :  { %2565 = vsyncpa [#allocation13], 1 }
 0x989   :  { %2566 = vsyncpa [#allocation16], 1 }
 0x98a   :  { %2567 = vsyncpa [#allocation8], 1 }
 0x98b   :  { %2569 = vsyncpa [#allocation8 + $0x1], 1 }
 0x98c   :  { %2570 = vsyncpa [#allocation20], 1 }
 0x98d   :  { %2572 = vsyncpa [#allocation20 + $0x1], 1 }

</bundles_post_ra>
